<compile_context>
chip_gen: v5e
topology: v5e:2x2
jax: 0.10.0
libtpu: 0.0.40
codegen_flags: <defaults>
</compile_context>

<pallas_src>
import math

import jax
import jax.numpy as jnp
from jax.experimental import pallas as pl
from jax.experimental.pallas import tpu as pltpu

# ---------------- configuration (synthetic, small) ----------------
HIDDEN     = 128
TIME_DIM   = 64
BE_DIM     = 64
NUM_LAYERS = 2
N_FREQS    = 8
N_SPACE    = 3
DIS_DIM    = N_FREQS * 2 * N_SPACE            # SinusoidsEmbedding.dim (48)
LAT_DIM    = 6                                # lattices flatten to 6 ("3 * 2" in edge_mlp)
STAT_DIM   = LAT_DIM + DIS_DIM                # 54: [lattices_flat_edges | frac_diff_emb]
NODE_FEAT_DIMS = [10, 6]                      # synthetic get_feature_dims()[0]
EDGE_FEAT_DIMS = [5]                          # synthetic get_feature_dims()[1]
OUT_PAD    = 128                              # lane-dense output slabs
LN_EPS     = 1e-5

_VMEM = pltpu.MemorySpace.VMEM


# ---------------- in-kernel helpers ----------------
def _mm(a, b):
    # bf16 MXU matmul with f32 accumulation (weights pre-cast to bf16 at prep time).
    return jnp.dot(a.astype(jnp.bfloat16), b.astype(jnp.bfloat16),
                   preferred_element_type=jnp.float32)


def _layer_norm(x, g, b):
    m = jnp.mean(x, axis=-1, keepdims=True)
    v = jnp.mean((x - m) ** 2, axis=-1, keepdims=True)
    return (x - m) * jax.lax.rsqrt(v + LN_EPS) * g + b


def _silu(x):
    return x * jax.nn.sigmoid(x)


# ---------------- fused Pallas kernel ----------------
def _fused_cspnet_kernel(
    # activations / graph tensors (VMEM)
    hinit_ref,                       # [N, H] f32  : h0 (graph-static) + t/be conditioning
    eemb_ref,                        # [E, H] bf16 : edge embedding (graph-static)
    estat_ref,                       # [E, 54] bf16: [lattice_flat | dis_emb(frac_diff)]
    gsrc_ref, gdst_ref,              # [E, N] bf16 : one-hot gather matrices
    scat_ref,                        # [N, E] bf16 : scatter-mean matrix (1/deg pre-scaled)
    pool_ref,                        # [B, N] bf16 : per-graph mean pooling
    # stacked per-layer CSPLayer weights [L, ...]
    lng_ref, lnb_ref,
    ew1e_ref, ew1i_ref, ew1j_ref, ew1s_ref, eb1_ref, ew2_ref, eb2_ref,
    nw1h_ref, nw1a_ref, nb1_ref, nw2_ref, nb2_ref,
    # head weights
    flng_ref, flnb_ref, wcoord_ref, wbeo_ref, bbeo_ref,
    # outputs (lane-dense slabs)
    coord_ref, beo_ref,
):
    h = hinit_ref[...]                          # [N, H] f32
    eemb = eemb_ref[...]                        # bf16
    estat = estat_ref[...]                      # bf16
    gsrc = gsrc_ref[...]                        # bf16
    gdst = gdst_ref[...]                        # bf16
    scat = scat_ref[...]                        # bf16

    for l in range(NUM_LAYERS):
        # ---- LayerNorm(node_input), one bf16 cast shared by gather + node_mlp ----
        hln = _layer_norm(h, lng_ref[l], lnb_ref[l])
        hln_bf = hln.astype(jnp.bfloat16)

        # ---- edge gather as one-hot matmuls (exact row selection of bf16 values) ----
        hi = jnp.dot(gsrc, hln_bf, preferred_element_type=jnp.float32).astype(jnp.bfloat16)
        hj = jnp.dot(gdst, hln_bf, preferred_element_type=jnp.float32).astype(jnp.bfloat16)

        # ---- edge_mlp first layer via split-weight accumulation (no concat, no padding) ----
        m = (jnp.dot(eemb, ew1e_ref[l], preferred_element_type=jnp.float32)
             + jnp.dot(hi, ew1i_ref[l], preferred_element_type=jnp.float32)
             + jnp.dot(hj, ew1j_ref[l], preferred_element_type=jnp.float32)
             + jnp.dot(estat, ew1s_ref[l], preferred_element_type=jnp.float32)
             + eb1_ref[l])
        m = _silu(m)
        m = _silu(_mm(m, ew2_ref[l]) + eb2_ref[l])          # [E, H] edge messages

        # ---- node_model: scatter-mean onto edge_index[0] as a matmul, then node_mlp ----
        agg = jnp.dot(scat, m.astype(jnp.bfloat16),
                      preferred_element_type=jnp.float32)    # [N, H], includes 1/deg
        o = (jnp.dot(hln_bf, nw1h_ref[l], preferred_element_type=jnp.float32)
             + jnp.dot(agg.astype(jnp.bfloat16), nw1a_ref[l],
                       preferred_element_type=jnp.float32)
             + nb1_ref[l])
        o = _silu(o)
        o = _silu(_mm(o, nw2_ref[l]) + nb2_ref[l])
        h = h + o                                             # residual

    # ---- head: final LayerNorm + coord_out + mean-pool be_out ----
    hf = _layer_norm(h, flng_ref[...], flnb_ref[...])
    hf_bf = hf.astype(jnp.bfloat16)
    coord_ref[...] = jnp.dot(hf_bf, wcoord_ref[...],
                             preferred_element_type=jnp.float32)          # [N, 128] slab
    pooled = jnp.dot(pool_ref[...], hf_bf, preferred_element_type=jnp.float32)
    beo_ref[...] = (jnp.dot(pooled.astype(jnp.bfloat16), wbeo_ref[...],
                            preferred_element_type=jnp.float32)
                    + bbeo_ref[...])                                      # [B, 128] slab


def fused_cspnet_call(graph, prep, h_init, estat_bf):
    N = h_init.shape[0]
    B = graph["pool_bf"].shape[0]
    args = (
        h_init, graph["edge_emb_bf"], estat_bf,
        graph["g_src"], graph["g_dst"], graph["scat"], graph["pool_bf"],
        prep["ln_g"], prep["ln_b"],
        prep["ew1_e"], prep["ew1_i"], prep["ew1_j"], prep["ew1_s"],
        prep["eb1"], prep["ew2"], prep["eb2"],
        prep["nw1_h"], prep["nw1_a"], prep["nb1"], prep["nw2"], prep["nb2"],
        prep["fln_g"], prep["fln_b"], prep["w_coord"], prep["w_beo"], prep["b_beo"],
    )
    coord_slab, be_slab = pl.pallas_call(
        _fused_cspnet_kernel,
        out_shape=(jax.ShapeDtypeStruct((N, OUT_PAD), jnp.float32),
                   jax.ShapeDtypeStruct((B, OUT_PAD), jnp.float32)),
        in_specs=[pl.BlockSpec(memory_space=_VMEM)] * len(args),
        out_specs=(pl.BlockSpec(memory_space=_VMEM),
                   pl.BlockSpec(memory_space=_VMEM)),
        compiler_params=pltpu.CompilerParams(
            # Explicit budget: tiny resident footprint here (<1 MiB weights + O(E*N) one-hot
            # matrices); 32 MiB keeps us clear of the 16 MiB v5e scoped default while fitting
            # v7x's 64 MiB physical VMEM.
            vmem_limit_bytes=32 * 1024 * 1024),
    )(*args)
    return coord_slab[:, :N_SPACE], be_slab[:, :1]


# ---------------- plain-JAX glue ----------------
def sinusoid_emb(x):  # SinusoidsEmbedding: [E, 3] -> [E, DIS_DIM]
    freqs = 2.0 * math.pi * jnp.arange(N_FREQS, dtype=jnp.float32)
    emb = x[..., None] * freqs[None, None, :]
    emb = emb.reshape(x.shape[0], N_FREQS * N_SPACE)
    return jnp.concatenate([jnp.sin(emb), jnp.cos(emb)], axis=-1)


def encoder_sum(tables, feats):  # Encoder: sum of categorical embeddings (gathers in glue)
    out = jnp.zeros((feats.shape[0], HIDDEN), jnp.float32)
    for i, tab in enumerate(tables):
        out = out + tab[feats[:, i]]
    return out


def prepare_graph(params, batch):
    """Graph-static preprocessing, cacheable across diffusion/ODE steps:
      - node/edge Encoder + ReLU + Linear embeddings
      - h0 = node_emb @ W_lat[:H] + b_lat          (node_emb part of atom_latent_emb)
      - one-hot gather matrices G_src/G_dst [E,N], scatter-mean matrix S [N,E] (1/deg scaled)
      - per-graph mean-pool matrix, lattice edge features."""
    node_feats = batch["node_feats"]
    edge_feats = batch["edge_feats"]
    edge_index = batch["edge_index"]
    node2graph = batch["node2graph"]
    edge2graph = batch["edge2graph"]
    lattices = batch["lattices"]
    N = node_feats.shape[0]
    B = lattices.shape[0]
    src = edge_index[0].astype(jnp.int32)
    dst = edge_index[1].astype(jnp.int32)

    onehot_src = (src[None, :] == jnp.arange(N)[:, None]).astype(jnp.float32)   # [N, E]
    onehot_dst = (dst[None, :] == jnp.arange(N)[:, None]).astype(jnp.float32)   # [N, E]
    deg = onehot_src.sum(axis=1)
    # Scatter-mean onto edge_index[0] (src), matching the DiffCSP CSPLayer.node_model.
    scat = (onehot_src / jnp.maximum(deg, 1.0)[:, None]).astype(jnp.bfloat16)   # [N, E]

    pool = (node2graph[None, :] == jnp.arange(B)[:, None]).astype(jnp.float32)
    pool = pool / jnp.maximum(pool.sum(axis=1, keepdims=True), 1.0)             # [B, N]

    node_enc = encoder_sum(params["node_emb_tables"], node_feats)               # [N, H]
    edge_enc = encoder_sum(params["edge_emb_tables"], edge_feats)               # [E, H]
    node_emb = (jnp.maximum(node_enc, 0.0) @ params["node_emb_w"]
                + params["node_emb_b"])                                         # [N, H]
    edge_emb = (jnp.maximum(edge_enc, 0.0) @ params["edge_emb_w"]
                + params["edge_emb_b"])                                         # [E, H]
    h0 = node_emb @ params["w_lat"][:HIDDEN] + params["b_lat"]                  # [N, H]

    return {
        "src": src, "dst": dst, "node2graph": node2graph,
        "g_src": onehot_src.T.astype(jnp.bfloat16),            # [E, N]
        "g_dst": onehot_dst.T.astype(jnp.bfloat16),            # [E, N]
        "scat": scat,                                          # [N, E]
        "pool_bf": pool.astype(jnp.bfloat16),                  # [B, N]
        "lat_edges": lattices.reshape(B, -1)[edge2graph],      # [E, 6]
        "edge_emb_bf": edge_emb.astype(jnp.bfloat16),          # [E, H]
        "h0": h0,                                              # [N, H] f32
    }


def cspnet_forward(prep, graph, frac_coords, t, be):
    # TODO(synk): CSPNet.forward is not shown in source (only __init__); this follows the
    # standard DiffCSP forward with the extra be conditioning and a mean-pool be_out head;
    # edge_index / edge2graph are supplied by the caller (radius-graph building not reproduced).
    src, dst = graph["src"], graph["dst"]

    # per-step edge geometry: wrapped frac diff -> sinusoidal embedding (no padding needed,
    # the edge_mlp first layer uses split weights)
    frac_diff = (frac_coords[dst] - frac_coords[src] + 0.5) % 1.0 - 0.5
    frac_emb = sinusoid_emb(frac_diff)
    estat_bf = jnp.concatenate([graph["lat_edges"], frac_emb],
                               axis=1).astype(jnp.bfloat16)               # [E, 54]

    # t / be conditioning fused with the atom_latent_emb split weights: [B, H] then per-node
    cond = (t @ prep["w_time"]) @ prep["wl_t"] + (be @ prep["w_be_cond"]) @ prep["wl_b"]
    h_init = graph["h0"] + cond[graph["node2graph"]]                      # [N, H]

    return fused_cspnet_call(graph, prep, h_init, estat_bf)


# ---------------- manifold (flat torus of fractional coords) ----------------
def manifold_projx(x):
    return x % 1.0


def manifold_proju(x, v):
    return v


def conjugated_forward(prep, graph, batch, t, x, cond_coords, cond_be):
    # TODO(synk): _conjugated_forward is abstract (raises NotImplementedError) in the source
    # class; implemented here as flat -> [N, 3] frac coords -> cspnet -> flat tangent.
    frac = x.reshape(-1, N_SPACE)
    be = cond_be if cond_be is not None else batch["y"]["be"]
    v, be_out = cspnet_forward(prep, graph, frac, t, be)
    return v.reshape(x.shape), be_out


def projected_cspnet_forward(prep, graph, batch, t, x, cond_coords=None, cond_be=None,
                             guidance_strength=0.0):
    x = manifold_projx(x)
    if cond_coords is not None:
        cond_coords = manifold_projx(cond_coords)
    v, be = conjugated_forward(prep, graph, batch, t, x, cond_coords, cond_be)
    if guidance_strength == 0.0:
        # Reference behaviour: recompute a second forward with zeroed batch.y and combine
        # with weight guidance_strength == 0, i.e. v += 0 * guid_v and be -> be / 1 — an
        # exactly-zero contribution, so the redundant second forward is skipped (identical
        # result).  For guidance_strength != 0 the reference performs NO extra forward, so
        # the plain (v, be) passthrough below also matches the reference.
        pass
    v = manifold_proju(x, v)
    return v, be


# ---------------- parameter init + one-time kernel weight prep ----------------
def init_params(key):
    keys = iter(jax.random.split(key, 64))

    def w(shape, scale=None):
        s = scale if scale is not None else 1.0 / math.sqrt(shape[0])
        return s * jax.random.normal(next(keys), shape, dtype=jnp.float32)

    edge_in_real = 3 * HIDDEN + STAT_DIM
    params = {
        "node_emb_tables": [w((d, HIDDEN), 0.1) for d in NODE_FEAT_DIMS],
        "edge_emb_tables": [w((d, HIDDEN), 0.1) for d in EDGE_FEAT_DIMS],
        "node_emb_w": w((HIDDEN, HIDDEN)), "node_emb_b": jnp.zeros((1, HIDDEN), jnp.float32),
        "edge_emb_w": w((HIDDEN, HIDDEN)), "edge_emb_b": jnp.zeros((1, HIDDEN), jnp.float32),
        "w_time": w((1, TIME_DIM)),                         # nn.Linear(1, time_dim, bias=False)
        "w_be":   w((1, BE_DIM)),                           # nn.Linear(1, be_dim, bias=False)
        "w_lat":  w((HIDDEN + TIME_DIM + BE_DIM, HIDDEN)),  # atom_latent_emb
        "b_lat":  jnp.zeros((1, HIDDEN), jnp.float32),
        "final_ln_g": jnp.ones((1, HIDDEN), jnp.float32),
        "final_ln_b": jnp.zeros((1, HIDDEN), jnp.float32),
        "w_coord": w((HIDDEN, N_SPACE)),                    # coord_out (no bias)
        "w_be_out": w((HIDDEN, 1)),
        "b_be_out": jnp.zeros((1, 1), jnp.float32),
        "layers": [],
    }
    for _ in range(NUM_LAYERS):
        params["layers"].append({
            "ln_g": jnp.ones((1, HIDDEN), jnp.float32),
            "ln_b": jnp.zeros((1, HIDDEN), jnp.float32),
            "edge_w1": w((edge_in_real, HIDDEN)), "edge_b1": jnp.zeros((1, HIDDEN), jnp.float32),
            "edge_w2": w((HIDDEN, HIDDEN)),       "edge_b2": jnp.zeros((1, HIDDEN), jnp.float32),
            "node_w1": w((2 * HIDDEN, HIDDEN)),   "node_b1": jnp.zeros((1, HIDDEN), jnp.float32),
            "node_w2": w((HIDDEN, HIDDEN)),       "node_b2": jnp.zeros((1, HIDDEN), jnp.float32),
        })
    return params


def prepare_weights(params):
    """One-time weight prep (hoisted out of the per-step path): split the concatenated
    Linear weights into per-input blocks, stack per-layer weights, pad the head to a
    lane-dense 128-wide slab and cast matmul operands to bf16 (f32 accumulation in-kernel)."""
    bf = lambda a: a.astype(jnp.bfloat16)
    H = HIDDEN

    def pad_cols(wt, cols):
        return jnp.concatenate([wt, jnp.zeros((wt.shape[0], cols - wt.shape[1]), wt.dtype)], 1)

    lay = params["layers"]
    stack = lambda name: jnp.stack([lp[name] for lp in lay], axis=0)
    ew1 = jnp.stack([lp["edge_w1"] for lp in lay], axis=0)    # [L, 3H+54, H]
    nw1 = jnp.stack([lp["node_w1"] for lp in lay], axis=0)    # [L, 2H, H]
    wl = params["w_lat"]
    return {
        # per-step glue (wrapper side): t/be conditioning collapsed with atom_latent_emb
        "w_time": params["w_time"], "w_be_cond": params["w_be"],
        "wl_t": wl[H:H + TIME_DIM], "wl_b": wl[H + TIME_DIM:],
        # stacked per-layer CSPLayer weights (split along the reference concat order
        # [edge_feats | hi | hj | lattices_flat | dis_emb])
        "ln_g": stack("ln_g"), "ln_b": stack("ln_b"),
        "ew1_e": bf(ew1[:, :H]), "ew1_i": bf(ew1[:, H:2 * H]),
        "ew1_j": bf(ew1[:, 2 * H:3 * H]), "ew1_s": bf(ew1[:, 3 * H:]),
        "eb1": stack("edge_b1"),
        "ew2": bf(stack("edge_w2")), "eb2": stack("edge_b2"),
        "nw1_h": bf(nw1[:, :H]), "nw1_a": bf(nw1[:, H:]), "nb1": stack("node_b1"),
        "nw2": bf(stack("node_w2")), "nb2": stack("node_b2"),
        # head
        "fln_g": params["final_ln_g"], "fln_b": params["final_ln_b"],
        "w_coord": bf(pad_cols(params["w_coord"], OUT_PAD)),
        "w_beo": bf(pad_cols(params["w_be_out"], OUT_PAD)),
        "b_beo": pad_cols(params["b_be_out"], OUT_PAD),
    }


# ---------------- demo ----------------
if __name__ == "__main__":
    key = jax.random.PRNGKey(0)
    k_param, k_data = jax.random.split(key)
    params = init_params(k_param)
    prep = prepare_weights(params)          # once per model

    N, E, B = 16, 32, 2
    kd = jax.random.split(k_data, 16)

    node_feats = jnp.stack(
        [jax.random.randint(kd[i], (N,), 0, d) for i, d in enumerate(NODE_FEAT_DIMS)], axis=1)
    edge_feats = jnp.stack(
        [jax.random.randint(kd[3 + i], (E,), 0, d) for i, d in enumerate(EDGE_FEAT_DIMS)], axis=1)

    node2graph = jnp.repeat(jnp.arange(B), N // B)
    npg, epg = N // B, E // B
    src0 = jax.random.randint(kd[5], (epg,), 0, npg)
    dst0 = jax.random.randint(kd[6], (epg,), 0, npg)
    src1 = jax.random.randint(kd[7], (epg,), 0, npg) + npg
    dst1 = jax.random.randint(kd[8], (epg,), 0, npg) + npg
    edge_index = jnp.stack([jnp.concatenate([src0, src1]),
                            jnp.concatenate([dst0, dst1])])
    edge2graph = jnp.repeat(jnp.arange(B), epg)

    lattices = jax.random.uniform(kd[9], (B, LAT_DIM), minval=1.0, maxval=10.0)
    t = jax.random.uniform(kd[10], (B, 1), dtype=jnp.float32)
    x_flat = jax.random.normal(kd[11], (N * N_SPACE,), dtype=jnp.float32)
    y_be = jax.random.normal(kd[12], (B, 1), dtype=jnp.float32)

    batch = {
        "node_feats": node_feats, "edge_feats": edge_feats,
        "edge_index": edge_index, "node2graph": node2graph, "edge2graph": edge2graph,
        "lattices": lattices, "y": {"be": y_be},
    }

    graph = prepare_graph(params, batch)    # once per batch, reusable across steps

    fwd = jax.jit(lambda p, g, b, tt, xx: projected_cspnet_forward(
        p, g, b, tt, xx, cond_coords=None, cond_be=None, guidance_strength=0.0))
    v, be = fwd(prep, graph, batch, t, x_flat)
    jax.block_until_ready((v, be))
    assert v.shape == (N * N_SPACE,) and be.shape == (B, 1)
    assert bool(jnp.all(jnp.isfinite(v))) and bool(jnp.all(jnp.isfinite(be)))
    print("KERNEL_OK")
</pallas_src>

<mosaic_0001>
module attributes {stable_mosaic.version = 11 : i64} {
  func.func @_fused_cspnet_kernel(%arg0: memref<16x128xf32, #tpu.memory_space<vmem>>, %arg1: memref<32x128xbf16, #tpu.memory_space<vmem>>, %arg2: memref<32x54xbf16, #tpu.memory_space<vmem>>, %arg3: memref<32x16xbf16, #tpu.memory_space<vmem>>, %arg4: memref<32x16xbf16, #tpu.memory_space<vmem>>, %arg5: memref<16x32xbf16, #tpu.memory_space<vmem>>, %arg6: memref<2x16xbf16, #tpu.memory_space<vmem>>, %arg7: memref<2x1x128xf32, #tpu.memory_space<vmem>>, %arg8: memref<2x1x128xf32, #tpu.memory_space<vmem>>, %arg9: memref<2x128x128xbf16, #tpu.memory_space<vmem>>, %arg10: memref<2x128x128xbf16, #tpu.memory_space<vmem>>, %arg11: memref<2x128x128xbf16, #tpu.memory_space<vmem>>, %arg12: memref<2x54x128xbf16, #tpu.memory_space<vmem>>, %arg13: memref<2x1x128xf32, #tpu.memory_space<vmem>>, %arg14: memref<2x128x128xbf16, #tpu.memory_space<vmem>>, %arg15: memref<2x1x128xf32, #tpu.memory_space<vmem>>, %arg16: memref<2x128x128xbf16, #tpu.memory_space<vmem>>, %arg17: memref<2x128x128xbf16, #tpu.memory_space<vmem>>, %arg18: memref<2x1x128xf32, #tpu.memory_space<vmem>>, %arg19: memref<2x128x128xbf16, #tpu.memory_space<vmem>>, %arg20: memref<2x1x128xf32, #tpu.memory_space<vmem>>, %arg21: memref<1x128xf32, #tpu.memory_space<vmem>>, %arg22: memref<1x128xf32, #tpu.memory_space<vmem>>, %arg23: memref<128x128xbf16, #tpu.memory_space<vmem>>, %arg24: memref<128x128xbf16, #tpu.memory_space<vmem>>, %arg25: memref<1x128xf32, #tpu.memory_space<vmem>>, %arg26: memref<16x128xf32, #tpu.memory_space<vmem>>, %arg27: memref<2x128xf32, #tpu.memory_space<vmem>>) attributes {dimension_semantics = [], scalar_prefetch = 0 : i64, scratch_operands = 0 : i64, tpu.core_type = #tpu.core_type<tc>} {
    %c0 = arith.constant 0 : index
    %c0_0 = arith.constant 0 : index
    %0 = vector.load %arg0[%c0, %c0_0] : memref<16x128xf32, #tpu.memory_space<vmem>>, vector<16x128xf32>
    %c0_1 = arith.constant 0 : index
    %c0_2 = arith.constant 0 : index
    %1 = vector.load %arg1[%c0_1, %c0_2] : memref<32x128xbf16, #tpu.memory_space<vmem>>, vector<32x128xbf16>
    %c0_3 = arith.constant 0 : index
    %c0_4 = arith.constant 0 : index
    %2 = vector.load %arg2[%c0_3, %c0_4] : memref<32x54xbf16, #tpu.memory_space<vmem>>, vector<32x54xbf16>
    %c0_5 = arith.constant 0 : index
    %c0_6 = arith.constant 0 : index
    %3 = vector.load %arg3[%c0_5, %c0_6] : memref<32x16xbf16, #tpu.memory_space<vmem>>, vector<32x16xbf16>
    %c0_7 = arith.constant 0 : index
    %c0_8 = arith.constant 0 : index
    %4 = vector.load %arg4[%c0_7, %c0_8] : memref<32x16xbf16, #tpu.memory_space<vmem>>, vector<32x16xbf16>
    %c0_9 = arith.constant 0 : index
    %c0_10 = arith.constant 0 : index
    %5 = vector.load %arg5[%c0_9, %c0_10] : memref<16x32xbf16, #tpu.memory_space<vmem>>, vector<16x32xbf16>
    %c0_11 = arith.constant 0 : index
    %c0_12 = arith.constant 0 : index
    %c0_13 = arith.constant 0 : index
    %6 = vector.load %arg7[%c0_11, %c0_12, %c0_13] : memref<2x1x128xf32, #tpu.memory_space<vmem>>, vector<1x1x128xf32>
    %7 = vector.shape_cast %6 : vector<1x1x128xf32> to vector<1x128xf32>
    %c0_14 = arith.constant 0 : index
    %c0_15 = arith.constant 0 : index
    %c0_16 = arith.constant 0 : index
    %8 = vector.load %arg8[%c0_14, %c0_15, %c0_16] : memref<2x1x128xf32, #tpu.memory_space<vmem>>, vector<1x1x128xf32>
    %9 = vector.shape_cast %8 : vector<1x1x128xf32> to vector<1x128xf32>
    %cst = arith.constant dense<0.000000e+00> : vector<16xf32>
    %10 = vector.multi_reduction <add>, %0, %cst [1] : vector<16x128xf32> to vector<16xf32>
    %11 = vector.shape_cast %10 : vector<16xf32> to vector<16x1xf32>
    %cst_17 = arith.constant 1.280000e+02 : f32
    %12 = vector.broadcast %cst_17 : f32 to vector<16x1xf32>
    %13 = arith.divf %11, %12 : vector<16x1xf32>
    %14 = vector.broadcast %13 : vector<16x1xf32> to vector<16x128xf32>
    %15 = arith.subf %0, %14 : vector<16x128xf32>
    %16 = arith.mulf %15, %15 : vector<16x128xf32>
    %cst_18 = arith.constant dense<0.000000e+00> : vector<16xf32>
    %17 = vector.multi_reduction <add>, %16, %cst_18 [1] : vector<16x128xf32> to vector<16xf32>
    %18 = vector.shape_cast %17 : vector<16xf32> to vector<16x1xf32>
    %cst_19 = arith.constant 1.280000e+02 : f32
    %19 = vector.broadcast %cst_19 : f32 to vector<16x1xf32>
    %20 = arith.divf %18, %19 : vector<16x1xf32>
    %21 = vector.broadcast %13 : vector<16x1xf32> to vector<16x128xf32>
    %22 = arith.subf %0, %21 : vector<16x128xf32>
    %cst_20 = arith.constant 9.99999974E-6 : f32
    %23 = vector.broadcast %cst_20 : f32 to vector<16x1xf32>
    %24 = arith.addf %20, %23 : vector<16x1xf32>
    %25 = math.rsqrt %24 : vector<16x1xf32>
    %26 = vector.broadcast %25 : vector<16x1xf32> to vector<16x128xf32>
    %27 = arith.mulf %22, %26 : vector<16x128xf32>
    %28 = vector.broadcast %7 : vector<1x128xf32> to vector<16x128xf32>
    %29 = arith.mulf %27, %28 : vector<16x128xf32>
    %30 = vector.broadcast %9 : vector<1x128xf32> to vector<16x128xf32>
    %31 = arith.addf %29, %30 : vector<16x128xf32>
    %32 = arith.truncf %31 : vector<16x128xf32> to vector<16x128xbf16>
    %cst_21 = arith.constant dense<0.000000e+00> : vector<32x128xf32>
    %33 = tpu.matmul %3, %32, %cst_21 {dimension_numbers = #tpu.dot_dimension_numbers<[1], [0], [0], [1], [0, 0, 1, 1], [], []>} : vector<32x16xbf16>, vector<16x128xbf16>, vector<32x128xf32> -> vector<32x128xf32>
    %34 = arith.truncf %33 : vector<32x128xf32> to vector<32x128xbf16>
    %cst_22 = arith.constant dense<0.000000e+00> : vector<32x128xf32>
    %35 = tpu.matmul %4, %32, %cst_22 {dimension_numbers = #tpu.dot_dimension_numbers<[1], [0], [0], [1], [0, 0, 1, 1], [], []>} : vector<32x16xbf16>, vector<16x128xbf16>, vector<32x128xf32> -> vector<32x128xf32>
    %36 = arith.truncf %35 : vector<32x128xf32> to vector<32x128xbf16>
    %c0_23 = arith.constant 0 : index
    %c0_24 = arith.constant 0 : index
    %c0_25 = arith.constant 0 : index
    %37 = vector.load %arg9[%c0_23, %c0_24, %c0_25] : memref<2x128x128xbf16, #tpu.memory_space<vmem>>, vector<1x128x128xbf16>
    %38 = vector.shape_cast %37 : vector<1x128x128xbf16> to vector<128x128xbf16>
    %cst_26 = arith.constant dense<0.000000e+00> : vector<32x128xf32>
    %39 = tpu.matmul %1, %38, %cst_26 {dimension_numbers = #tpu.dot_dimension_numbers<[1], [0], [0], [1], [0, 0, 1, 1], [], []>} : vector<32x128xbf16>, vector<128x128xbf16>, vector<32x128xf32> -> vector<32x128xf32>
    %c0_27 = arith.constant 0 : index
    %c0_28 = arith.constant 0 : index
    %c0_29 = arith.constant 0 : index
    %40 = vector.load %arg10[%c0_27, %c0_28, %c0_29] : memref<2x128x128xbf16, #tpu.memory_space<vmem>>, vector<1x128x128xbf16>
    %41 = vector.shape_cast %40 : vector<1x128x128xbf16> to vector<128x128xbf16>
    %cst_30 = arith.constant dense<0.000000e+00> : vector<32x128xf32>
    %42 = tpu.matmul %34, %41, %cst_30 {dimension_numbers = #tpu.dot_dimension_numbers<[1], [0], [0], [1], [0, 0, 1, 1], [], []>} : vector<32x128xbf16>, vector<128x128xbf16>, vector<32x128xf32> -> vector<32x128xf32>
    %43 = arith.addf %39, %42 : vector<32x128xf32>
    %c0_31 = arith.constant 0 : index
    %c0_32 = arith.constant 0 : index
    %c0_33 = arith.constant 0 : index
    %44 = vector.load %arg11[%c0_31, %c0_32, %c0_33] : memref<2x128x128xbf16, #tpu.memory_space<vmem>>, vector<1x128x128xbf16>
    %45 = vector.shape_cast %44 : vector<1x128x128xbf16> to vector<128x128xbf16>
    %cst_34 = arith.constant dense<0.000000e+00> : vector<32x128xf32>
    %46 = tpu.matmul %36, %45, %cst_34 {dimension_numbers = #tpu.dot_dimension_numbers<[1], [0], [0], [1], [0, 0, 1, 1], [], []>} : vector<32x128xbf16>, vector<128x128xbf16>, vector<32x128xf32> -> vector<32x128xf32>
    %47 = arith.addf %43, %46 : vector<32x128xf32>
    %c0_35 = arith.constant 0 : index
    %c0_36 = arith.constant 0 : index
    %c0_37 = arith.constant 0 : index
    %48 = vector.load %arg12[%c0_35, %c0_36, %c0_37] : memref<2x54x128xbf16, #tpu.memory_space<vmem>>, vector<1x54x128xbf16>
    %49 = vector.shape_cast %48 : vector<1x54x128xbf16> to vector<54x128xbf16>
    %cst_38 = arith.constant dense<0.000000e+00> : vector<32x128xf32>
    %50 = tpu.matmul %2, %49, %cst_38 {dimension_numbers = #tpu.dot_dimension_numbers<[1], [0], [0], [1], [0, 0, 1, 1], [], []>} : vector<32x54xbf16>, vector<54x128xbf16>, vector<32x128xf32> -> vector<32x128xf32>
    %51 = arith.addf %47, %50 : vector<32x128xf32>
    %c0_39 = arith.constant 0 : index
    %c0_40 = arith.constant 0 : index
    %c0_41 = arith.constant 0 : index
    %52 = vector.load %arg13[%c0_39, %c0_40, %c0_41] : memref<2x1x128xf32, #tpu.memory_space<vmem>>, vector<1x1x128xf32>
    %53 = vector.shape_cast %52 : vector<1x1x128xf32> to vector<1x128xf32>
    %54 = vector.broadcast %53 : vector<1x128xf32> to vector<32x128xf32>
    %55 = arith.addf %51, %54 : vector<32x128xf32>
    %56 = arith.negf %55 : vector<32x128xf32>
    %57 = math.exp %56 : vector<32x128xf32>
    %cst_42 = arith.constant 1.000000e+00 : f32
    %58 = vector.broadcast %cst_42 : f32 to vector<32x128xf32>
    %59 = arith.addf %58, %57 : vector<32x128xf32>
    %60 = arith.divf %58, %59 : vector<32x128xf32>
    %61 = arith.mulf %55, %60 : vector<32x128xf32>
    %c0_43 = arith.constant 0 : index
    %c0_44 = arith.constant 0 : index
    %c0_45 = arith.constant 0 : index
    %62 = vector.load %arg14[%c0_43, %c0_44, %c0_45] : memref<2x128x128xbf16, #tpu.memory_space<vmem>>, vector<1x128x128xbf16>
    %63 = vector.shape_cast %62 : vector<1x128x128xbf16> to vector<128x128xbf16>
    %64 = arith.truncf %61 : vector<32x128xf32> to vector<32x128xbf16>
    %cst_46 = arith.constant dense<0.000000e+00> : vector<32x128xf32>
    %65 = tpu.matmul %64, %63, %cst_46 {dimension_numbers = #tpu.dot_dimension_numbers<[1], [0], [0], [1], [0, 0, 1, 1], [], []>} : vector<32x128xbf16>, vector<128x128xbf16>, vector<32x128xf32> -> vector<32x128xf32>
    %c0_47 = arith.constant 0 : index
    %c0_48 = arith.constant 0 : index
    %c0_49 = arith.constant 0 : index
    %66 = vector.load %arg15[%c0_47, %c0_48, %c0_49] : memref<2x1x128xf32, #tpu.memory_space<vmem>>, vector<1x1x128xf32>
    %67 = vector.shape_cast %66 : vector<1x1x128xf32> to vector<1x128xf32>
    %68 = vector.broadcast %67 : vector<1x128xf32> to vector<32x128xf32>
    %69 = arith.addf %65, %68 : vector<32x128xf32>
    %70 = arith.negf %69 : vector<32x128xf32>
    %71 = math.exp %70 : vector<32x128xf32>
    %cst_50 = arith.constant 1.000000e+00 : f32
    %72 = vector.broadcast %cst_50 : f32 to vector<32x128xf32>
    %73 = arith.addf %72, %71 : vector<32x128xf32>
    %74 = arith.divf %72, %73 : vector<32x128xf32>
    %75 = arith.mulf %69, %74 : vector<32x128xf32>
    %76 = arith.truncf %75 : vector<32x128xf32> to vector<32x128xbf16>
    %cst_51 = arith.constant dense<0.000000e+00> : vector<16x128xf32>
    %77 = tpu.matmul %5, %76, %cst_51 {dimension_numbers = #tpu.dot_dimension_numbers<[1], [0], [0], [1], [0, 0, 1, 1], [], []>} : vector<16x32xbf16>, vector<32x128xbf16>, vector<16x128xf32> -> vector<16x128xf32>
    %c0_52 = arith.constant 0 : index
    %c0_53 = arith.constant 0 : index
    %c0_54 = arith.constant 0 : index
    %78 = vector.load %arg16[%c0_52, %c0_53, %c0_54] : memref<2x128x128xbf16, #tpu.memory_space<vmem>>, vector<1x128x128xbf16>
    %79 = vector.shape_cast %78 : vector<1x128x128xbf16> to vector<128x128xbf16>
    %cst_55 = arith.constant dense<0.000000e+00> : vector<16x128xf32>
    %80 = tpu.matmul %32, %79, %cst_55 {dimension_numbers = #tpu.dot_dimension_numbers<[1], [0], [0], [1], [0, 0, 1, 1], [], []>} : vector<16x128xbf16>, vector<128x128xbf16>, vector<16x128xf32> -> vector<16x128xf32>
    %81 = arith.truncf %77 : vector<16x128xf32> to vector<16x128xbf16>
    %c0_56 = arith.constant 0 : index
    %c0_57 = arith.constant 0 : index
    %c0_58 = arith.constant 0 : index
    %82 = vector.load %arg17[%c0_56, %c0_57, %c0_58] : memref<2x128x128xbf16, #tpu.memory_space<vmem>>, vector<1x128x128xbf16>
    %83 = vector.shape_cast %82 : vector<1x128x128xbf16> to vector<128x128xbf16>
    %cst_59 = arith.constant dense<0.000000e+00> : vector<16x128xf32>
    %84 = tpu.matmul %81, %83, %cst_59 {dimension_numbers = #tpu.dot_dimension_numbers<[1], [0], [0], [1], [0, 0, 1, 1], [], []>} : vector<16x128xbf16>, vector<128x128xbf16>, vector<16x128xf32> -> vector<16x128xf32>
    %85 = arith.addf %80, %84 : vector<16x128xf32>
    %c0_60 = arith.constant 0 : index
    %c0_61 = arith.constant 0 : index
    %c0_62 = arith.constant 0 : index
    %86 = vector.load %arg18[%c0_60, %c0_61, %c0_62] : memref<2x1x128xf32, #tpu.memory_space<vmem>>, vector<1x1x128xf32>
    %87 = vector.shape_cast %86 : vector<1x1x128xf32> to vector<1x128xf32>
    %88 = vector.broadcast %87 : vector<1x128xf32> to vector<16x128xf32>
    %89 = arith.addf %85, %88 : vector<16x128xf32>
    %90 = arith.negf %89 : vector<16x128xf32>
    %91 = math.exp %90 : vector<16x128xf32>
    %cst_63 = arith.constant 1.000000e+00 : f32
    %92 = vector.broadcast %cst_63 : f32 to vector<16x128xf32>
    %93 = arith.addf %92, %91 : vector<16x128xf32>
    %94 = arith.divf %92, %93 : vector<16x128xf32>
    %95 = arith.mulf %89, %94 : vector<16x128xf32>
    %c0_64 = arith.constant 0 : index
    %c0_65 = arith.constant 0 : index
    %c0_66 = arith.constant 0 : index
    %96 = vector.load %arg19[%c0_64, %c0_65, %c0_66] : memref<2x128x128xbf16, #tpu.memory_space<vmem>>, vector<1x128x128xbf16>
    %97 = vector.shape_cast %96 : vector<1x128x128xbf16> to vector<128x128xbf16>
    %98 = arith.truncf %95 : vector<16x128xf32> to vector<16x128xbf16>
    %cst_67 = arith.constant dense<0.000000e+00> : vector<16x128xf32>
    %99 = tpu.matmul %98, %97, %cst_67 {dimension_numbers = #tpu.dot_dimension_numbers<[1], [0], [0], [1], [0, 0, 1, 1], [], []>} : vector<16x128xbf16>, vector<128x128xbf16>, vector<16x128xf32> -> vector<16x128xf32>
    %c0_68 = arith.constant 0 : index
    %c0_69 = arith.constant 0 : index
    %c0_70 = arith.constant 0 : index
    %100 = vector.load %arg20[%c0_68, %c0_69, %c0_70] : memref<2x1x128xf32, #tpu.memory_space<vmem>>, vector<1x1x128xf32>
    %101 = vector.shape_cast %100 : vector<1x1x128xf32> to vector<1x128xf32>
    %102 = vector.broadcast %101 : vector<1x128xf32> to vector<16x128xf32>
    %103 = arith.addf %99, %102 : vector<16x128xf32>
    %104 = arith.negf %103 : vector<16x128xf32>
    %105 = math.exp %104 : vector<16x128xf32>
    %cst_71 = arith.constant 1.000000e+00 : f32
    %106 = vector.broadcast %cst_71 : f32 to vector<16x128xf32>
    %107 = arith.addf %106, %105 : vector<16x128xf32>
    %108 = arith.divf %106, %107 : vector<16x128xf32>
    %109 = arith.mulf %103, %108 : vector<16x128xf32>
    %110 = arith.addf %0, %109 : vector<16x128xf32>
    %c1 = arith.constant 1 : index
    %c0_72 = arith.constant 0 : index
    %c0_73 = arith.constant 0 : index
    %111 = vector.load %arg7[%c1, %c0_72, %c0_73] : memref<2x1x128xf32, #tpu.memory_space<vmem>>, vector<1x1x128xf32>
    %112 = vector.shape_cast %111 : vector<1x1x128xf32> to vector<1x128xf32>
    %c1_74 = arith.constant 1 : index
    %c0_75 = arith.constant 0 : index
    %c0_76 = arith.constant 0 : index
    %113 = vector.load %arg8[%c1_74, %c0_75, %c0_76] : memref<2x1x128xf32, #tpu.memory_space<vmem>>, vector<1x1x128xf32>
    %114 = vector.shape_cast %113 : vector<1x1x128xf32> to vector<1x128xf32>
    %cst_77 = arith.constant dense<0.000000e+00> : vector<16xf32>
    %115 = vector.multi_reduction <add>, %110, %cst_77 [1] : vector<16x128xf32> to vector<16xf32>
    %116 = vector.shape_cast %115 : vector<16xf32> to vector<16x1xf32>
    %cst_78 = arith.constant 1.280000e+02 : f32
    %117 = vector.broadcast %cst_78 : f32 to vector<16x1xf32>
    %118 = arith.divf %116, %117 : vector<16x1xf32>
    %119 = vector.broadcast %118 : vector<16x1xf32> to vector<16x128xf32>
    %120 = arith.subf %110, %119 : vector<16x128xf32>
    %121 = arith.mulf %120, %120 : vector<16x128xf32>
    %cst_79 = arith.constant dense<0.000000e+00> : vector<16xf32>
    %122 = vector.multi_reduction <add>, %121, %cst_79 [1] : vector<16x128xf32> to vector<16xf32>
    %123 = vector.shape_cast %122 : vector<16xf32> to vector<16x1xf32>
    %cst_80 = arith.constant 1.280000e+02 : f32
    %124 = vector.broadcast %cst_80 : f32 to vector<16x1xf32>
    %125 = arith.divf %123, %124 : vector<16x1xf32>
    %126 = vector.broadcast %118 : vector<16x1xf32> to vector<16x128xf32>
    %127 = arith.subf %110, %126 : vector<16x128xf32>
    %cst_81 = arith.constant 9.99999974E-6 : f32
    %128 = vector.broadcast %cst_81 : f32 to vector<16x1xf32>
    %129 = arith.addf %125, %128 : vector<16x1xf32>
    %130 = math.rsqrt %129 : vector<16x1xf32>
    %131 = vector.broadcast %130 : vector<16x1xf32> to vector<16x128xf32>
    %132 = arith.mulf %127, %131 : vector<16x128xf32>
    %133 = vector.broadcast %112 : vector<1x128xf32> to vector<16x128xf32>
    %134 = arith.mulf %132, %133 : vector<16x128xf32>
    %135 = vector.broadcast %114 : vector<1x128xf32> to vector<16x128xf32>
    %136 = arith.addf %134, %135 : vector<16x128xf32>
    %137 = arith.truncf %136 : vector<16x128xf32> to vector<16x128xbf16>
    %cst_82 = arith.constant dense<0.000000e+00> : vector<32x128xf32>
    %138 = tpu.matmul %3, %137, %cst_82 {dimension_numbers = #tpu.dot_dimension_numbers<[1], [0], [0], [1], [0, 0, 1, 1], [], []>} : vector<32x16xbf16>, vector<16x128xbf16>, vector<32x128xf32> -> vector<32x128xf32>
    %139 = arith.truncf %138 : vector<32x128xf32> to vector<32x128xbf16>
    %cst_83 = arith.constant dense<0.000000e+00> : vector<32x128xf32>
    %140 = tpu.matmul %4, %137, %cst_83 {dimension_numbers = #tpu.dot_dimension_numbers<[1], [0], [0], [1], [0, 0, 1, 1], [], []>} : vector<32x16xbf16>, vector<16x128xbf16>, vector<32x128xf32> -> vector<32x128xf32>
    %141 = arith.truncf %140 : vector<32x128xf32> to vector<32x128xbf16>
    %c1_84 = arith.constant 1 : index
    %c0_85 = arith.constant 0 : index
    %c0_86 = arith.constant 0 : index
    %142 = vector.load %arg9[%c1_84, %c0_85, %c0_86] : memref<2x128x128xbf16, #tpu.memory_space<vmem>>, vector<1x128x128xbf16>
    %143 = vector.shape_cast %142 : vector<1x128x128xbf16> to vector<128x128xbf16>
    %cst_87 = arith.constant dense<0.000000e+00> : vector<32x128xf32>
    %144 = tpu.matmul %1, %143, %cst_87 {dimension_numbers = #tpu.dot_dimension_numbers<[1], [0], [0], [1], [0, 0, 1, 1], [], []>} : vector<32x128xbf16>, vector<128x128xbf16>, vector<32x128xf32> -> vector<32x128xf32>
    %c1_88 = arith.constant 1 : index
    %c0_89 = arith.constant 0 : index
    %c0_90 = arith.constant 0 : index
    %145 = vector.load %arg10[%c1_88, %c0_89, %c0_90] : memref<2x128x128xbf16, #tpu.memory_space<vmem>>, vector<1x128x128xbf16>
    %146 = vector.shape_cast %145 : vector<1x128x128xbf16> to vector<128x128xbf16>
    %cst_91 = arith.constant dense<0.000000e+00> : vector<32x128xf32>
    %147 = tpu.matmul %139, %146, %cst_91 {dimension_numbers = #tpu.dot_dimension_numbers<[1], [0], [0], [1], [0, 0, 1, 1], [], []>} : vector<32x128xbf16>, vector<128x128xbf16>, vector<32x128xf32> -> vector<32x128xf32>
    %148 = arith.addf %144, %147 : vector<32x128xf32>
    %c1_92 = arith.constant 1 : index
    %c0_93 = arith.constant 0 : index
    %c0_94 = arith.constant 0 : index
    %149 = vector.load %arg11[%c1_92, %c0_93, %c0_94] : memref<2x128x128xbf16, #tpu.memory_space<vmem>>, vector<1x128x128xbf16>
    %150 = vector.shape_cast %149 : vector<1x128x128xbf16> to vector<128x128xbf16>
    %cst_95 = arith.constant dense<0.000000e+00> : vector<32x128xf32>
    %151 = tpu.matmul %141, %150, %cst_95 {dimension_numbers = #tpu.dot_dimension_numbers<[1], [0], [0], [1], [0, 0, 1, 1], [], []>} : vector<32x128xbf16>, vector<128x128xbf16>, vector<32x128xf32> -> vector<32x128xf32>
    %152 = arith.addf %148, %151 : vector<32x128xf32>
    %c1_96 = arith.constant 1 : index
    %c0_97 = arith.constant 0 : index
    %c0_98 = arith.constant 0 : index
    %153 = vector.load %arg12[%c1_96, %c0_97, %c0_98] : memref<2x54x128xbf16, #tpu.memory_space<vmem>>, vector<1x54x128xbf16>
    %154 = vector.shape_cast %153 : vector<1x54x128xbf16> to vector<54x128xbf16>
    %cst_99 = arith.constant dense<0.000000e+00> : vector<32x128xf32>
    %155 = tpu.matmul %2, %154, %cst_99 {dimension_numbers = #tpu.dot_dimension_numbers<[1], [0], [0], [1], [0, 0, 1, 1], [], []>} : vector<32x54xbf16>, vector<54x128xbf16>, vector<32x128xf32> -> vector<32x128xf32>
    %156 = arith.addf %152, %155 : vector<32x128xf32>
    %c1_100 = arith.constant 1 : index
    %c0_101 = arith.constant 0 : index
    %c0_102 = arith.constant 0 : index
    %157 = vector.load %arg13[%c1_100, %c0_101, %c0_102] : memref<2x1x128xf32, #tpu.memory_space<vmem>>, vector<1x1x128xf32>
    %158 = vector.shape_cast %157 : vector<1x1x128xf32> to vector<1x128xf32>
    %159 = vector.broadcast %158 : vector<1x128xf32> to vector<32x128xf32>
    %160 = arith.addf %156, %159 : vector<32x128xf32>
    %161 = arith.negf %160 : vector<32x128xf32>
    %162 = math.exp %161 : vector<32x128xf32>
    %cst_103 = arith.constant 1.000000e+00 : f32
    %163 = vector.broadcast %cst_103 : f32 to vector<32x128xf32>
    %164 = arith.addf %163, %162 : vector<32x128xf32>
    %165 = arith.divf %163, %164 : vector<32x128xf32>
    %166 = arith.mulf %160, %165 : vector<32x128xf32>
    %c1_104 = arith.constant 1 : index
    %c0_105 = arith.constant 0 : index
    %c0_106 = arith.constant 0 : index
    %167 = vector.load %arg14[%c1_104, %c0_105, %c0_106] : memref<2x128x128xbf16, #tpu.memory_space<vmem>>, vector<1x128x128xbf16>
    %168 = vector.shape_cast %167 : vector<1x128x128xbf16> to vector<128x128xbf16>
    %169 = arith.truncf %166 : vector<32x128xf32> to vector<32x128xbf16>
    %cst_107 = arith.constant dense<0.000000e+00> : vector<32x128xf32>
    %170 = tpu.matmul %169, %168, %cst_107 {dimension_numbers = #tpu.dot_dimension_numbers<[1], [0], [0], [1], [0, 0, 1, 1], [], []>} : vector<32x128xbf16>, vector<128x128xbf16>, vector<32x128xf32> -> vector<32x128xf32>
    %c1_108 = arith.constant 1 : index
    %c0_109 = arith.constant 0 : index
    %c0_110 = arith.constant 0 : index
    %171 = vector.load %arg15[%c1_108, %c0_109, %c0_110] : memref<2x1x128xf32, #tpu.memory_space<vmem>>, vector<1x1x128xf32>
    %172 = vector.shape_cast %171 : vector<1x1x128xf32> to vector<1x128xf32>
    %173 = vector.broadcast %172 : vector<1x128xf32> to vector<32x128xf32>
    %174 = arith.addf %170, %173 : vector<32x128xf32>
    %175 = arith.negf %174 : vector<32x128xf32>
    %176 = math.exp %175 : vector<32x128xf32>
    %cst_111 = arith.constant 1.000000e+00 : f32
    %177 = vector.broadcast %cst_111 : f32 to vector<32x128xf32>
    %178 = arith.addf %177, %176 : vector<32x128xf32>
    %179 = arith.divf %177, %178 : vector<32x128xf32>
    %180 = arith.mulf %174, %179 : vector<32x128xf32>
    %181 = arith.truncf %180 : vector<32x128xf32> to vector<32x128xbf16>
    %cst_112 = arith.constant dense<0.000000e+00> : vector<16x128xf32>
    %182 = tpu.matmul %5, %181, %cst_112 {dimension_numbers = #tpu.dot_dimension_numbers<[1], [0], [0], [1], [0, 0, 1, 1], [], []>} : vector<16x32xbf16>, vector<32x128xbf16>, vector<16x128xf32> -> vector<16x128xf32>
    %c1_113 = arith.constant 1 : index
    %c0_114 = arith.constant 0 : index
    %c0_115 = arith.constant 0 : index
    %183 = vector.load %arg16[%c1_113, %c0_114, %c0_115] : memref<2x128x128xbf16, #tpu.memory_space<vmem>>, vector<1x128x128xbf16>
    %184 = vector.shape_cast %183 : vector<1x128x128xbf16> to vector<128x128xbf16>
    %cst_116 = arith.constant dense<0.000000e+00> : vector<16x128xf32>
    %185 = tpu.matmul %137, %184, %cst_116 {dimension_numbers = #tpu.dot_dimension_numbers<[1], [0], [0], [1], [0, 0, 1, 1], [], []>} : vector<16x128xbf16>, vector<128x128xbf16>, vector<16x128xf32> -> vector<16x128xf32>
    %186 = arith.truncf %182 : vector<16x128xf32> to vector<16x128xbf16>
    %c1_117 = arith.constant 1 : index
    %c0_118 = arith.constant 0 : index
    %c0_119 = arith.constant 0 : index
    %187 = vector.load %arg17[%c1_117, %c0_118, %c0_119] : memref<2x128x128xbf16, #tpu.memory_space<vmem>>, vector<1x128x128xbf16>
    %188 = vector.shape_cast %187 : vector<1x128x128xbf16> to vector<128x128xbf16>
    %cst_120 = arith.constant dense<0.000000e+00> : vector<16x128xf32>
    %189 = tpu.matmul %186, %188, %cst_120 {dimension_numbers = #tpu.dot_dimension_numbers<[1], [0], [0], [1], [0, 0, 1, 1], [], []>} : vector<16x128xbf16>, vector<128x128xbf16>, vector<16x128xf32> -> vector<16x128xf32>
    %190 = arith.addf %185, %189 : vector<16x128xf32>
    %c1_121 = arith.constant 1 : index
    %c0_122 = arith.constant 0 : index
    %c0_123 = arith.constant 0 : index
    %191 = vector.load %arg18[%c1_121, %c0_122, %c0_123] : memref<2x1x128xf32, #tpu.memory_space<vmem>>, vector<1x1x128xf32>
    %192 = vector.shape_cast %191 : vector<1x1x128xf32> to vector<1x128xf32>
    %193 = vector.broadcast %192 : vector<1x128xf32> to vector<16x128xf32>
    %194 = arith.addf %190, %193 : vector<16x128xf32>
    %195 = arith.negf %194 : vector<16x128xf32>
    %196 = math.exp %195 : vector<16x128xf32>
    %cst_124 = arith.constant 1.000000e+00 : f32
    %197 = vector.broadcast %cst_124 : f32 to vector<16x128xf32>
    %198 = arith.addf %197, %196 : vector<16x128xf32>
    %199 = arith.divf %197, %198 : vector<16x128xf32>
    %200 = arith.mulf %194, %199 : vector<16x128xf32>
    %c1_125 = arith.constant 1 : index
    %c0_126 = arith.constant 0 : index
    %c0_127 = arith.constant 0 : index
    %201 = vector.load %arg19[%c1_125, %c0_126, %c0_127] : memref<2x128x128xbf16, #tpu.memory_space<vmem>>, vector<1x128x128xbf16>
    %202 = vector.shape_cast %201 : vector<1x128x128xbf16> to vector<128x128xbf16>
    %203 = arith.truncf %200 : vector<16x128xf32> to vector<16x128xbf16>
    %cst_128 = arith.constant dense<0.000000e+00> : vector<16x128xf32>
    %204 = tpu.matmul %203, %202, %cst_128 {dimension_numbers = #tpu.dot_dimension_numbers<[1], [0], [0], [1], [0, 0, 1, 1], [], []>} : vector<16x128xbf16>, vector<128x128xbf16>, vector<16x128xf32> -> vector<16x128xf32>
    %c1_129 = arith.constant 1 : index
    %c0_130 = arith.constant 0 : index
    %c0_131 = arith.constant 0 : index
    %205 = vector.load %arg20[%c1_129, %c0_130, %c0_131] : memref<2x1x128xf32, #tpu.memory_space<vmem>>, vector<1x1x128xf32>
    %206 = vector.shape_cast %205 : vector<1x1x128xf32> to vector<1x128xf32>
    %207 = vector.broadcast %206 : vector<1x128xf32> to vector<16x128xf32>
    %208 = arith.addf %204, %207 : vector<16x128xf32>
    %209 = arith.negf %208 : vector<16x128xf32>
    %210 = math.exp %209 : vector<16x128xf32>
    %cst_132 = arith.constant 1.000000e+00 : f32
    %211 = vector.broadcast %cst_132 : f32 to vector<16x128xf32>
    %212 = arith.addf %211, %210 : vector<16x128xf32>
    %213 = arith.divf %211, %212 : vector<16x128xf32>
    %214 = arith.mulf %208, %213 : vector<16x128xf32>
    %215 = arith.addf %110, %214 : vector<16x128xf32>
    %c0_133 = arith.constant 0 : index
    %c0_134 = arith.constant 0 : index
    %216 = vector.load %arg21[%c0_133, %c0_134] : memref<1x128xf32, #tpu.memory_space<vmem>>, vector<1x128xf32>
    %c0_135 = arith.constant 0 : index
    %c0_136 = arith.constant 0 : index
    %217 = vector.load %arg22[%c0_135, %c0_136] : memref<1x128xf32, #tpu.memory_space<vmem>>, vector<1x128xf32>
    %cst_137 = arith.constant dense<0.000000e+00> : vector<16xf32>
    %218 = vector.multi_reduction <add>, %215, %cst_137 [1] : vector<16x128xf32> to vector<16xf32>
    %219 = vector.shape_cast %218 : vector<16xf32> to vector<16x1xf32>
    %cst_138 = arith.constant 1.280000e+02 : f32
    %220 = vector.broadcast %cst_138 : f32 to vector<16x1xf32>
    %221 = arith.divf %219, %220 : vector<16x1xf32>
    %222 = vector.broadcast %221 : vector<16x1xf32> to vector<16x128xf32>
    %223 = arith.subf %215, %222 : vector<16x128xf32>
    %224 = arith.mulf %223, %223 : vector<16x128xf32>
    %cst_139 = arith.constant dense<0.000000e+00> : vector<16xf32>
    %225 = vector.multi_reduction <add>, %224, %cst_139 [1] : vector<16x128xf32> to vector<16xf32>
    %226 = vector.shape_cast %225 : vector<16xf32> to vector<16x1xf32>
    %cst_140 = arith.constant 1.280000e+02 : f32
    %227 = vector.broadcast %cst_140 : f32 to vector<16x1xf32>
    %228 = arith.divf %226, %227 : vector<16x1xf32>
    %229 = vector.broadcast %221 : vector<16x1xf32> to vector<16x128xf32>
    %230 = arith.subf %215, %229 : vector<16x128xf32>
    %cst_141 = arith.constant 9.99999974E-6 : f32
    %231 = vector.broadcast %cst_141 : f32 to vector<16x1xf32>
    %232 = arith.addf %228, %231 : vector<16x1xf32>
    %233 = math.rsqrt %232 : vector<16x1xf32>
    %234 = vector.broadcast %233 : vector<16x1xf32> to vector<16x128xf32>
    %235 = arith.mulf %230, %234 : vector<16x128xf32>
    %236 = vector.broadcast %216 : vector<1x128xf32> to vector<16x128xf32>
    %237 = arith.mulf %235, %236 : vector<16x128xf32>
    %238 = vector.broadcast %217 : vector<1x128xf32> to vector<16x128xf32>
    %239 = arith.addf %237, %238 : vector<16x128xf32>
    %240 = arith.truncf %239 : vector<16x128xf32> to vector<16x128xbf16>
    %c0_142 = arith.constant 0 : index
    %c0_143 = arith.constant 0 : index
    %241 = vector.load %arg23[%c0_142, %c0_143] : memref<128x128xbf16, #tpu.memory_space<vmem>>, vector<128x128xbf16>
    %cst_144 = arith.constant dense<0.000000e+00> : vector<16x128xf32>
    %242 = tpu.matmul %240, %241, %cst_144 {dimension_numbers = #tpu.dot_dimension_numbers<[1], [0], [0], [1], [0, 0, 1, 1], [], []>} : vector<16x128xbf16>, vector<128x128xbf16>, vector<16x128xf32> -> vector<16x128xf32>
    %c0_145 = arith.constant 0 : index
    %c0_146 = arith.constant 0 : index
    %243 = vector.load %arg26[%c0_145, %c0_146] : memref<16x128xf32, #tpu.memory_space<vmem>>, vector<16x128xf32>
    tpu.vector_store %arg26[%c0_145, %c0_146], %242 {strides = array<i32>} : memref<16x128xf32, #tpu.memory_space<vmem>>, vector<16x128xf32>,
    %c0_147 = arith.constant 0 : index
    %c0_148 = arith.constant 0 : index
    %244 = vector.load %arg6[%c0_147, %c0_148] : memref<2x16xbf16, #tpu.memory_space<vmem>>, vector<2x16xbf16>
    %cst_149 = arith.constant dense<0.000000e+00> : vector<2x128xf32>
    %245 = tpu.matmul %244, %240, %cst_149 {dimension_numbers = #tpu.dot_dimension_numbers<[1], [0], [0], [1], [0, 0, 1, 1], [], []>} : vector<2x16xbf16>, vector<16x128xbf16>, vector<2x128xf32> -> vector<2x128xf32>
    %246 = arith.truncf %245 : vector<2x128xf32> to vector<2x128xbf16>
    %c0_150 = arith.constant 0 : index
    %c0_151 = arith.constant 0 : index
    %247 = vector.load %arg24[%c0_150, %c0_151] : memref<128x128xbf16, #tpu.memory_space<vmem>>, vector<128x128xbf16>
    %cst_152 = arith.constant dense<0.000000e+00> : vector<2x128xf32>
    %248 = tpu.matmul %246, %247, %cst_152 {dimension_numbers = #tpu.dot_dimension_numbers<[1], [0], [0], [1], [0, 0, 1, 1], [], []>} : vector<2x128xbf16>, vector<128x128xbf16>, vector<2x128xf32> -> vector<2x128xf32>
    %c0_153 = arith.constant 0 : index
    %c0_154 = arith.constant 0 : index
    %249 = vector.load %arg25[%c0_153, %c0_154] : memref<1x128xf32, #tpu.memory_space<vmem>>, vector<1x128xf32>
    %250 = vector.broadcast %249 : vector<1x128xf32> to vector<2x128xf32>
    %251 = arith.addf %248, %250 : vector<2x128xf32>
    %c0_155 = arith.constant 0 : index
    %c0_156 = arith.constant 0 : index
    %252 = vector.load %arg27[%c0_155, %c0_156] : memref<2x128xf32, #tpu.memory_space<vmem>>, vector<2x128xf32>
    tpu.vector_store %arg27[%c0_155, %c0_156], %251 {strides = array<i32>} : memref<2x128xf32, #tpu.memory_space<vmem>>, vector<2x128xf32>,
    return
  }
}

</mosaic_0001>

<bundles_post_ra>
// kernel: _lambda_.1
= control target key start
LH: loop header
LB: loop body
LE: loop exit
PB: predicated region body
PF: predicated region fallthrough
CT: control target
= control target key end

     0   :  { %v3461_v2 = vmov 128.0   ;;  %vm551_vm7 = vcmask 1042432   ;;  %vm176_vm8 = vcmask 130048   ;;  %vm544_vm9 = vcmask 441344   ;;  %s4353_s0 = inlined_call_operand.vmem [shape: f32[16,128], index: 0, kind: input, shape index: {}]   ;;  %s4354_s7 = inlined_call_operand.vmem [shape: f32[2,1,128], index: 7, kind: input, shape index: {}]   ;;  %s4355_s8 = inlined_call_operand.vmem [shape: f32[2,1,128], index: 8, kind: input, shape index: {}]   ;;  %s4356_s12 = inlined_call_operand.vmem [shape: bf16[2,54,128], index: 12, kind: input, shape index: {}]   ;;  %s4357_s3 = inlined_call_operand.vmem [shape: bf16[32,16], index: 3, kind: input, shape index: {}]   ;;  %s4358_s4 = inlined_call_operand.vmem [shape: bf16[32,16], index: 4, kind: input, shape index: {}]   ;;  %s4359_s16 = inlined_call_operand.vmem [shape: bf16[2,128,128], index: 16, kind: input, shape index: {}]   ;;  %s4360_s2 = inlined_call_operand.vmem [shape: bf16[32,54], index: 2, kind: input, shape index: {}]   ;;  %s4361_s9 = inlined_call_operand.vmem [shape: bf16[2,128,128], index: 9, kind: input, shape index: {}]   ;;  %s4362_s11 = inlined_call_operand.vmem [shape: bf16[2,128,128], index: 11, kind: input, shape index: {}]   ;;  %s4363_s10 = inlined_call_operand.vmem [shape: bf16[2,128,128], index: 10, kind: input, shape index: {}]   ;;  %s4364_s1 = inlined_call_operand.vmem [shape: bf16[32,128], index: 1, kind: input, shape index: {}]   ;;  %s4365_s13 = inlined_call_operand.vmem [shape: f32[2,1,128], index: 13, kind: input, shape index: {}]   ;;  %s4366_s15 = inlined_call_operand.vmem [shape: f32[2,1,128], index: 15, kind: input, shape index: {}]   ;;  %s4367_s14 = inlined_call_operand.vmem [shape: bf16[2,128,128], index: 14, kind: input, shape index: {}]   ;;  %s4368_s17 = inlined_call_operand.vmem [shape: bf16[2,128,128], index: 17, kind: input, shape index: {}]   ;;  %s4369_s5 = inlined_call_operand.vmem [shape: bf16[16,32], index: 5, kind: input, shape index: {}]   ;;  %s4370_s18 = inlined_call_operand.vmem [shape: f32[2,1,128], index: 18, kind: input, shape index: {}]   ;;  %s4371_s20 = inlined_call_operand.vmem [shape: f32[2,1,128], index: 20, kind: input, shape index: {}]   ;;  %s4372_s19 = inlined_call_operand.vmem [shape: bf16[2,128,128], index: 19, kind: input, shape index: {}]   ;;  %s4373_s21 = inlined_call_operand.vmem [shape: f32[1,128], index: 21, kind: input, shape index: {}]   ;;  %s4374_s22 = inlined_call_operand.vmem [shape: f32[1,128], index: 22, kind: input, shape index: {}]   ;;  %s4375_s23 = inlined_call_operand.vmem [shape: bf16[128,128], index: 23, kind: input, shape index: {}]   ;;  %s4376_s24 = inlined_call_operand.vmem [shape: bf16[128,128], index: 24, kind: input, shape index: {}]   ;;  %s4377_s6 = inlined_call_operand.vmem [shape: bf16[2,16], index: 6, kind: input, shape index: {}]   ;;  %s4378_s25 = inlined_call_operand.vmem [shape: f32[1,128], index: 25, kind: input, shape index: {}]   ;;  %s4379_s26 = inlined_call_operand.vmem [shape: f32[16,128], index: 26, kind: output, shape index: {0}]   ;;  %s4380_s27 = inlined_call_operand.vmem [shape: f32[2,128], index: 27, kind: output, shape index: {1}]  }
   0x1   :  { %4395 = sst [smem:[#allocation2_spill]] %s4353_s0  ;;  %3341 = vrcp.f32 %v3461_v2 }
   0x2   :  { %4396 = sst [smem:[#allocation3_spill]] %s4354_s7 }
   0x3   :  { %4397 = sst [smem:[#allocation4_spill]] %s4355_s8 }
   0x4   :  { %4398 = sst [smem:[#allocation5_spill]] %s4356_s12 }
   0x5   :  { %4399 = sst [smem:[#allocation6_spill]] %s4357_s3 }
   0x6   :  { %4400 = sst [smem:[#allocation7_spill]] %s4358_s4 }
   0x7   :  { %4401 = sst [smem:[#allocation8_spill]] %s4359_s16  ;;  %v3342_v3 = vpop.eup %3341 }
   0x8   :  { %4402 = sst [smem:[#allocation9_spill]] %s4360_s2  ;;  %v113_v4 = vmul.f32 128.0, %v3342_v3  ;;  %vm117_vm0 = vweird.f32 %v3342_v3 }
   0x9   :  { %4403 = sst [smem:[#allocation10_spill]] %s4361_s9 }
   0xa   :  { %4404 = sst [smem:[#allocation11_spill]] %s4362_s11  ;;  %v114_v5 = vsub.f32 1.0, %v113_v4 }
   0xb   :  { %4405 = sst [smem:[#allocation12_spill]] %s4363_s10 }
   0xc   :  { %4406 = sst [smem:[#allocation13_spill]] %s4364_s1  ;;  %v115_v6 = vmul.f32 %v3342_v3, %v114_v5 }
   0xd   :  { %4407 = sst [smem:[#allocation14_spill]] %s4373_s21 }
   0xe   :  { %4408 = sst [smem:[#allocation15_spill]] %s4374_s22  ;;  %v116_v7 = vadd.f32 %v3342_v3, %v115_v6 }
   0xf   :  { %4409 = sst [smem:[#allocation16_spill]] %s4376_s24 }
  0x10   :  { %4410 = sst [smem:[#allocation17_spill]] %s4377_s6  ;;  %v3608_v8 = vsel %vm117_vm0, %v3342_v3, %v116_v7 }
  0x11   :  { %4411 = sst [smem:[#allocation18_spill]] %s4378_s25 }
  0x12   :  { %4412 = sst [smem:[#allocation19_spill]] %s4379_s26 }
  0x13   :  { %4413 = sst [smem:[#allocation20_spill]] %s4380_s27 }
  0x14   :  { %s4414_s9 = sld [smem:[#allocation2_spill]] }
  0x15   :  { %s4415_s0 = sld [smem:[#allocation5_spill]] }
  0x16   :  { %s4416_s1 = sld [smem:[#allocation3_spill]] }
  0x17   :  { %s4417_s2 = sld [smem:[#allocation4_spill]] }
  0x18   :  { %s4418_s8 = sld [smem:[#allocation6_spill]] }
  0x19   :  { %s4419_s4 = sld [smem:[#allocation7_spill]] }
  0x1a   :  { %v86_v0 = vld [vmem:[%s4414_s9] sm:$0xff]  ;;  %v87_v1 = vld [vmem:[%s4414_s9 + $0x8] sm:$0xff]  ;;  %s4420_s11 = sld [smem:[#allocation8_spill]] }
  0x1b   :  { %108 = vadd.xlane.f32.xlu0 %v86_v0  ;;  %v512_v35 = vld [vmem:[%s4415_s0 + $0x18] sm:$0x7]  ;;  %v3217_v52 = vld [vmem:[%s4415_s0 + $0x10] sm:$0xff]  ;;  %v3216_v53 = vld [vmem:[%s4415_s0 + $0x8] sm:$0xff]  ;;  %s4421_s7 = sld [smem:[#allocation9_spill]] }
  0x1c   :  { %v3326_v37 = vld [vmem:[%s4416_s1] ss:$0 sm:$0xff]  ;;  %v536_v39 = vunpack.c.l.b16 %v512_v35  ;;  %s4422_s25 = sld [smem:[#allocation10_spill]] }
  0x1d   :  { %v3327_v43 = vld [vmem:[%s4417_s2] ss:$0 sm:$0xff]  ;;  %s4423_s28 = sld [smem:[#allocation11_spill]] }
  0x1e   :  { %v540_v45 = vpack.c.b16 %v536_v39, %v536_v39  ;;  %v3186_v50 = vld [vmem:[%s4418_s8] sm:$0xff]  ;;  %v3187_v57 = vld [vmem:[%s4418_s8 + $0x8] sm:$0xff]  ;;  %s4424_s29 = sld [smem:[#allocation12_spill]] }
  0x1f   :  { %v3188_v51 = vld [vmem:[%s4419_s4] sm:$0xff]  ;;  %v3189_v58 = vld [vmem:[%s4419_s4 + $0x8] sm:$0xff]  ;;  %s4425_s12 = sld [smem:[#allocation13_spill]] }
  0x20   :  { %v553_v49 = vsel %vm551_vm7, %v540_v45, 0  ;;  %v3215_v54 = vld [vmem:[%s4415_s0] sm:$0xff]  ;;  %v3233_v55 = vld [vmem:[%s4420_s11 + $0x38] sm:$0xff]  ;;  %v3232_v56 = vld [vmem:[%s4420_s11 + $0x30] sm:$0xff]  ;;  %s4442_s24 = sld [smem:[#allocation19_spill]] }
  0x21   :  { %v3231_v59 = vld [vmem:[%s4420_s11 + $0x28] sm:$0xff]  ;;  %v3230_v60 = vld [vmem:[%s4420_s11 + $0x20] sm:$0xff]  ;;  %v3229_v61 = vld [vmem:[%s4420_s11 + $0x18] sm:$0xff] }
  0x22   :  { %v3228_v62 = vld [vmem:[%s4420_s11 + $0x10] sm:$0xff]  ;;  %v3184_v63 = vld [vmem:[%s4421_s7] sm:$0xff] }
  0x23   :  { %110 = vadd.xlane.f32.xlu0 %v87_v1  ;;  %v3214_v2 = vld [vmem:[%s4423_s28 + $0x38] sm:$0xff]  ;;  %v3197_v4 = vld [vmem:[%s4422_s25 + $0x30] sm:$0xff]  ;;  %v3226_v6 = vld [vmem:[%s4420_s11] sm:$0xff] }
  0x24   :  { %v3206_v3 = vld [vmem:[%s4424_s29 + $0x38] sm:$0xff]  ;;  %483 = vmatpush.bf16.msra.mxu0 %v3214_v2  ;;  %v3213_v5 = vld [vmem:[%s4423_s28 + $0x30] sm:$0xff] }
  0x25   :  { %321 = vmatpush.bf16.msra.mxu2 %v3206_v3  ;;  %v3205_v7 = vld [vmem:[%s4424_s29 + $0x30] sm:$0xff] }
  0x28   :  { %484 = vmatpush.bf16.msra.mxu0 %v3213_v5 }
  0x29   :  { %322 = vmatpush.bf16.msra.mxu2 %v3205_v7 }
  0x8e   :  { %v109_v9 = vpop.xlane.xlu0 %108 }
  0x8f   :  { %v119_v10 = vmul.f32 %v3608_v8, %v109_v9  ;;  %v3196_v9 = vld [vmem:[%s4422_s25 + $0x28] sm:$0xff] }
  0x91   :  { %v121_v11 = vsub.f32 %v86_v0, %v119_v10  ;;  %v3227_v0 = vld [vmem:[%s4420_s11 + $0x8] sm:$0xff] }
  0x92   :  { %v3212_v10 = vld [vmem:[%s4423_s28 + $0x28] sm:$0xff] }
  0x93   :  { %v123_v12 = vmul.f32 %v121_v11, %v121_v11  ;;  %485 = vmatpush.bf16.msra.mxu0 %v3212_v10 }
  0x95   :  { %125 = vadd.xlane.f32.xlu1 %v123_v12  ;;  %v3195_v12 = vld [vmem:[%s4422_s25 + $0x20] sm:$0xff] }
  0x96   :  { %v111_v13 = vpop.xlane.xlu0 %110 }
  0x97   :  { %v120_v14 = vmul.f32 %v3608_v8, %v111_v13  ;;  %v3211_v13 = vld [vmem:[%s4423_s28 + $0x20] sm:$0xff] }
  0x98   :  { %486 = vmatpush.bf16.msra.mxu0 %v3211_v13 }
  0x99   :  { %v122_v15 = vsub.f32 %v87_v1, %v120_v14  ;;  %v3198_v1 = vld [vmem:[%s4422_s25 + $0x38] sm:$0xff]  ;;  %v3203_v14 = vld [vmem:[%s4424_s29 + $0x20] sm:$0xff] }
  0x9b   :  { %v124_v16 = vmul.f32 %v122_v15, %v122_v15 }
  0x9d   :  { %127 = vadd.xlane.f32.xlu1 %v124_v16  ;;  %v3194_v16 = vld [vmem:[%s4422_s25 + $0x18] sm:$0xff] }
 0x108   :  { %v126_v17 = vpop.xlane.xlu1 %125 }
 0x109   :  { %v129_v18 = vmul.f32 %v126_v17, %v3608_v8  ;;  %v3210_v17 = vld [vmem:[%s4423_s28 + $0x18] sm:$0xff] }
 0x10a   :  { %487 = vmatpush.bf16.msra.mxu0 %v3210_v17 }
 0x10b   :  { %v131_v19 = vadd.f32 1e-05, %v129_v18  ;;  %v3193_v18 = vld [vmem:[%s4422_s25 + $0x10] sm:$0xff] }
 0x10d   :  { %3343 = vrsqrt.f32 %v131_v19  ;;  %vm139_vm2 = vweird.f32 %v131_v19 }
 0x110   :  { %v128_v20 = vpop.xlane.xlu1 %127 }
 0x111   :  { %v130_v21 = vmul.f32 %v128_v20, %v3608_v8  ;;  %v3202_v20 = vld [vmem:[%s4424_s29 + $0x18] sm:$0xff] }
 0x113   :  { %v3344_v22 = vpop.eup %3343  ;;  %v132_v23 = vadd.f32 1e-05, %v130_v21  ;;  %v3192_v21 = vld [vmem:[%s4422_s25 + $0x8] sm:$0xff] }
 0x114   :  { %v134_v24 = vmul.f32 %v3344_v22, %v131_v19  ;;  %vm140_vm1 = vweird.f32 %v3344_v22  ;;  %v3209_v19 = vld [vmem:[%s4423_s28 + $0x10] sm:$0xff] }
 0x115   :  { %3345 = vrsqrt.f32 %v132_v23  ;;  %vm141_vm3 = vmor %vm139_vm2, %vm140_vm1  ;;  %vm149_vm5 = vweird.f32 %v132_v23  ;;  %488 = vmatpush.bf16.msra.mxu0 %v3209_v19 }
 0x116   :  { %v135_v25 = vmul.f32 %v3344_v22, %v134_v24  ;;  %v3191_v24 = vld [vmem:[%s4422_s25] sm:$0xff] }
 0x118   :  { %v136_v26 = vmul.f32 0.5, %v135_v25  ;;  %v3207_v25 = vld [vmem:[%s4423_s28] sm:$0xff] }
 0x11a   :  { %v137_v27 = vsub.f32 1.5, %v136_v26  ;;  %v3755_v26 = vld [vmem:[%s4425_s12] sm:$0xff] }
 0x11b   :  { %v3346_v28 = vpop.eup %3345 }
 0x11c   :  { %v138_v29 = vmul.f32 %v3344_v22, %v137_v27  ;;  %v144_v30 = vmul.f32 %v3346_v28, %v132_v23  ;;  %vm150_vm4 = vweird.f32 %v3346_v28  ;;  %v3201_v23 = vld [vmem:[%s4424_s29 + $0x10] sm:$0xff]  ;;  %v3200_v27 = vld [vmem:[%s4424_s29 + $0x8] sm:$0xff] }
 0x11d   :  { %vm151_vm6 = vmor %vm149_vm5, %vm150_vm4 }
 0x11e   :  { %v145_v31 = vmul.f32 %v3346_v28, %v144_v30  ;;  %v142_v32 = vsel %vm141_vm3, %v3344_v22, %v138_v29  ;;  %v3208_v22 = vld [vmem:[%s4423_s28 + $0x8] sm:$0xff] }
 0x11f   :  { %v153_v36 = vmul.f32 %v142_v32, %v121_v11  ;;  %v3204_v11 = vld [vmem:[%s4424_s29 + $0x28] sm:$0xff]  ;;  %489 = vmatpush.bf16.msra.mxu0 %v3208_v22 }
 0x120   :  { %v146_v33 = vmul.f32 0.5, %v145_v31  ;;  %323 = vmatpush.bf16.msra.mxu2 %v3204_v11  ;;  %v3183_v29 = vld [vmem:[%s4425_s12 + $0x8] sm:$0xff] }
 0x121   :  { %v158_v42 = vmul.f32 %v3326_v37, %v153_v36 }
 0x122   :  { %v147_v34 = vsub.f32 1.5, %v146_v33 }
 0x123   :  { %v163_v46 = vadd.f32 %v3327_v43, %v158_v42  ;;  %490 = vmatpush.bf16.msra.mxu0 %v3207_v25  ;;  %v3225_v42 = vld [vmem:[%s4367_s14 + $0x38] sm:$0xff] }
 0x124   :  { %v148_v38 = vmul.f32 %v3346_v28, %v147_v34  ;;  %324 = vmatpush.bf16.msra.mxu2 %v3203_v14 }
 0x126   :  { %v152_v40 = vsel %vm151_vm6, %v3346_v28, %v148_v38  ;;  %v3199_v28 = vld [vmem:[%s4424_s29] sm:$0xff] }
 0x127   :  { %v154_v41 = vmul.f32 %v152_v40, %v122_v15  ;;  %v3185_v15 = vld [vmem:[%s4421_s7 + $0x8] sm:$0xff] }
 0x128   :  { %325 = vmatpush.bf16.msra.mxu2 %v3202_v20 }
 0x129   :  { %v159_v44 = vmul.f32 %v3326_v37, %v154_v41 }
 0x12b   :  { %v164_v47 = vadd.f32 %v3327_v43, %v159_v44  ;;  %v3224_v43 = vld [vmem:[%s4367_s14 + $0x30] sm:$0xff]  ;;  %v3223_v44 = vld [vmem:[%s4367_s14 + $0x28] sm:$0xff] }
 0x12c   :  { %326 = vmatpush.bf16.msra.mxu2 %v3201_v23 }
 0x12d   :  { %v3623_v48 = vpack.c.bf16 %v164_v47, %v163_v46  ;;  %v3222_v47 = vld [vmem:[%s4367_s14 + $0x20] sm:$0xff] }
 0x12f   :  { %190 = vmatpush.bf16.msra.mxu3 %v3623_v48  ;;  %227 = vmatpush.bf16.msra.mxu1 %v3623_v48 }
 0x130   :  { %327 = vmatpush.bf16.msra.mxu2 %v3200_v27 }
 0x132   :  { %2454 = vmatmul.msk.bf16.vlgmr.msra.gmra.mxu3 %vm176_vm8, %v3186_v50  ;;  %2464 = vmatmul.msk.bf16.vlgmr.msra.gmra.mxu1 %vm176_vm8, %v3188_v51 }
 0x133   :  { %559 = vmatpush.bf16.msrb.mxu1 %v553_v49  ;;  %400 = vmatpush.bf16.msrb.mxu3 %v3198_v1  ;;  %v3221_v49 = vld [vmem:[%s4367_s14 + $0x18] sm:$0xff] }
 0x134   :  { %328 = vmatpush.bf16.msra.mxu2 %v3199_v28 }
 0x137   :  { %560 = vmatpush.bf16.msrb.mxu1 %v3217_v52  ;;  %401 = vmatpush.bf16.msrb.mxu3 %v3197_v4  ;;  %v3220_v52 = vld [vmem:[%s4367_s14 + $0x10] sm:$0xff] }
 0x138   :  { %736 = vmatpush.bf16.msrb.mxu2 %v3225_v42 }
 0x13b   :  { %561 = vmatpush.bf16.msrb.mxu1 %v3216_v53  ;;  %402 = vmatpush.bf16.msrb.mxu3 %v3196_v9 }
 0x13c   :  { %737 = vmatpush.bf16.msrb.mxu2 %v3224_v43 }
 0x13f   :  { %562 = vmatpush.bf16.msrb.mxu1 %v3215_v54  ;;  %403 = vmatpush.bf16.msrb.mxu3 %v3195_v12  ;;  %v3330_v54 = vld [vmem:[%s4365_s13] ss:$0 sm:$0xff] }
 0x140   :  { %738 = vmatpush.bf16.msrb.mxu2 %v3223_v44 }
 0x142   :  { %2455 = vmatmul.msk.bf16.gmra.mxu3 %vm176_vm8, %v3187_v57  ;;  %2465 = vmatmul.msk.bf16.gmra.mxu1 %vm176_vm8, %v3189_v58  ;;  %v3219_v58 = vld [vmem:[%s4367_s14 + $0x8] sm:$0xff] }
 0x143   :  { %1003 = vmatpush.bf16.msra.mxu1 %v3233_v55  ;;  %404 = vmatpush.bf16.msrb.mxu3 %v3194_v16 }
 0x144   :  { %739 = vmatpush.bf16.msrb.mxu2 %v3222_v47 }
 0x147   :  { %1004 = vmatpush.bf16.msra.mxu1 %v3232_v56  ;;  %405 = vmatpush.bf16.msrb.mxu3 %v3193_v18 }
 0x148   :  { %740 = vmatpush.bf16.msrb.mxu2 %v3221_v49 }
 0x14b   :  { %1005 = vmatpush.bf16.msra.mxu1 %v3231_v59  ;;  %406 = vmatpush.bf16.msrb.mxu3 %v3192_v21 }
 0x14c   :  { %741 = vmatpush.bf16.msrb.mxu2 %v3220_v52 }
 0x14f   :  { %1006 = vmatpush.bf16.msra.mxu1 %v3230_v60  ;;  %407 = vmatpush.bf16.msrb.mxu3 %v3191_v24 }
 0x150   :  { %742 = vmatpush.bf16.msrb.mxu2 %v3219_v58 }
 0x152   :  { %2590 = vmatmul.msk.bf16.vlgmr.msrb.gmra.mxu1 %vm544_vm9, %v3184_v63  ;;  %408 = vmatmul.bf16.vlgmr.msrb.gmra.mxu3 %v3755_v26 }
 0x153   :  { %1007 = vmatpush.bf16.msra.mxu1 %v3229_v61 }
 0x157   :  { %1008 = vmatpush.bf16.msra.mxu1 %v3228_v62 }
 0x15b   :  { %1009 = vmatpush.bf16.msra.mxu1 %v3227_v0  ;;  %v3218_v0 = vld [vmem:[%s4367_s14] sm:$0xff] }
 0x15c   :  { %743 = vmatpush.bf16.msrb.mxu2 %v3218_v0 }
 0x15f   :  { %1010 = vmatpush.bf16.msra.mxu1 %v3226_v6 }
 0x162   :  { %2591 = vmatmul.msk.bf16.gmra.mxu1 %vm544_vm9, %v3185_v15  ;;  %413 = vmatmul.bf16.gmra.mxu3 %v3183_v29 }
 0x172   :  { %1011 = vmatmul.bf16.vlgmr.msra.gmra.mxu1 %v3623_v48 }
 0x1af   :  { %v229_v30 = vpop.f32.mrf.mxu1 }
 0x1b5   :  { %v192_v31 = vpop.f32.mrf.mxu3 }
 0x1b7   :  { %v231_v32 = vpop.f32.mrf.mxu1 }
 0x1b8   :  { %v239_v33 = vpack.c.bf16 %v231_v32, %v229_v30 }
 0x1ba   :  { %491 = vmatmul.bf16.vlgmr.msra.gmra.mxu0 %v239_v33 }
 0x1bd   :  { %v194_v34 = vpop.f32.mrf.mxu3 }
 0x1be   :  { %v202_v35 = vpack.c.bf16 %v194_v34, %v192_v31 }
 0x1bf   :  { %v234_v36 = vpop.f32.mrf.mxu1 }
 0x1c0   :  { %329 = vmatmul.bf16.vlgmr.msra.gmra.mxu2 %v202_v35 }
 0x1c5   :  { %v197_v37 = vpop.f32.mrf.mxu3 }
 0x1c7   :  { %v236_v38 = vpop.f32.mrf.mxu1 }
 0x1c8   :  { %v240_v39 = vpack.c.bf16 %v236_v38, %v234_v36 }
 0x1ca   :  { %496 = vmatmul.bf16.gmra.mxu0 %v240_v39 }
 0x1cd   :  { %v199_v40 = vpop.f32.mrf.mxu3 }
 0x1ce   :  { %v203_v41 = vpack.c.bf16 %v199_v40, %v197_v37 }
 0x1cf   :  { %v564_v48 = vpop.f32.mrf.mxu1 }
 0x1d0   :  { %334 = vmatmul.bf16.gmra.mxu2 %v203_v41 }
 0x1d5   :  { %v409_v45 = vpop.f32.mrf.mxu3 }
 0x1d7   :  { %v566_v60 = vpop.f32.mrf.mxu1 }
 0x1dd   :  { %v411_v55 = vpop.f32.mrf.mxu3 }
 0x1df   :  { %v569_v11 = vpop.f32.mrf.mxu1 }
 0x1e5   :  { %v414_v3 = vpop.f32.mrf.mxu3 }
 0x1e7   :  { %v571_v27 = vpop.f32.mrf.mxu1 }
 0x1ed   :  { %v416_v16 = vpop.f32.mrf.mxu3 }
 0x237   :  { %v492_v46 = vpop.f32.mrf.mxu0 }
 0x23f   :  { %v494_v57 = vpop.f32.mrf.mxu0 }
 0x243   :  { %v330_v50 = vpop.f32.mrf.mxu2 }
 0x244   :  { %v410_v51 = vadd.f32 %v409_v45, %v330_v50 }
 0x246   :  { %v502_v53 = vadd.f32 %v492_v46, %v410_v51 }
 0x247   :  { %v497_v5 = vpop.f32.mrf.mxu0 }
 0x248   :  { %v574_v56 = vadd.f32 %v564_v48, %v502_v53 }
 0x24a   :  { %v3791_v59 = vadd.f32 %v3330_v54, %v574_v56 }
 0x24b   :  { %v332_v61 = vpop.f32.mrf.mxu2 }
 0x24c   :  { %v2592_v62 = vmul.f32 -1.442695, %v3791_v59  ;;  %v412_v63 = vadd.f32 %v411_v55, %v332_v61 }
 0x24e   :  { %3347 = vpow2.f32 %v2592_v62  ;;  %v503_v1 = vadd.f32 %v494_v57, %v412_v63 }
 0x24f   :  { %v499_v23 = vpop.f32.mrf.mxu0 }
 0x250   :  { %v575_v2 = vadd.f32 %v566_v60, %v503_v1 }
 0x252   :  { %v3797_v4 = vadd.f32 %v3330_v54, %v575_v2 }
 0x253   :  { %v335_v6 = vpop.f32.mrf.mxu2 }
 0x254   :  { %v3348_v7 = vpop.eup %3347  ;;  %v2593_v9 = vmul.f32 -1.442695, %v3797_v4  ;;  %v415_v10 = vadd.f32 %v414_v3, %v335_v6 }
 0x255   :  { %v598_v12 = vadd.f32 1.0, %v3348_v7 }
 0x256   :  { %3349 = vpow2.f32 %v2593_v9  ;;  %v504_v13 = vadd.f32 %v497_v5, %v415_v10 }
 0x257   :  { %3351 = vrcp.f32 %v598_v12  ;;  %v613_v38 = vand.u32 2147483648, %v598_v12  ;;  %vm607_vm11 = vweird.f32 %v598_v12  ;;  %v611_v39 = vand.u32 2147483647, %v598_v12 }
 0x258   :  { %v576_v14 = vadd.f32 %v569_v11, %v504_v13 }
 0x259   :  { %v614_v45 = vor.u32 1.1754944e-38, %v613_v38  ;;  %vm612_vm14 = vcmp.eq.f32.partialorder %v611_v39, 8.507059e+37  ;;  %v3241_v38 = vld [vmem:[%s4368_s17 + $0x38] sm:$0xff] }
 0x25a   :  { %v3800_v15 = vadd.f32 %v3330_v54, %v576_v14  ;;  %941 = vmatpush.bf16.msrb.mxu0 %v3241_v38  ;;  %v3248_v38 = vld [vmem:[%s4372_s19 + $0x30] sm:$0xff] }
 0x25b   :  { %v337_v17 = vpop.f32.mrf.mxu2 }
 0x25c   :  { %v3350_v18 = vpop.eup %3349  ;;  %v417_v19 = vadd.f32 %v416_v16, %v337_v17  ;;  %v2594_v20 = vmul.f32 -1.442695, %v3800_v15 }
 0x25d   :  { %v3352_v21 = vpop.eup %3351  ;;  %v599_v22 = vadd.f32 1.0, %v3350_v18  ;;  %v3331_v18 = vld [vmem:[%s4366_s15] ss:$0 sm:$0xff] }
 0x25e   :  { %v505_v24 = vadd.f32 %v499_v23, %v417_v19  ;;  %v603_v25 = vmul.f32 %v3352_v21, %v598_v12  ;;  %3353 = vpow2.f32 %v2594_v20  ;;  %vm608_vm10 = vweird.f32 %v3352_v21 }
 0x25f   :  { %3355 = vrcp.f32 %v599_v22  ;;  %vm609_vm12 = vmor %vm607_vm11, %vm608_vm10  ;;  %v628_v41 = vand.u32 2147483648, %v599_v22  ;;  %v626_v44 = vand.u32 2147483647, %v599_v22  ;;  %vm622_vm15 = vweird.f32 %v599_v22 }
 0x260   :  { %v577_v28 = vadd.f32 %v571_v27, %v505_v24  ;;  %v604_v29 = vsub.f32 1.0, %v603_v25 }
 0x261   :  { %v629_v50 = vor.u32 1.1754944e-38, %v628_v41  ;;  %vm627_vm1 = vcmp.eq.f32.partialorder %v626_v44, 8.507059e+37  ;;  %v3240_v44 = vld [vmem:[%s4368_s17 + $0x30] sm:$0xff] }
 0x262   :  { %v605_v30 = vmul.f32 %v3352_v21, %v604_v29  ;;  %v3803_v31 = vadd.f32 %v3330_v54, %v577_v28  ;;  %942 = vmatpush.bf16.msrb.mxu0 %v3240_v44  ;;  %v3332_v44 = vld [vmem:[%s4370_s18] ss:$0 sm:$0xff] }
 0x264   :  { %v3354_v32 = vpop.eup %3353  ;;  %v2595_v33 = vmul.f32 -1.442695, %v3803_v31  ;;  %v606_v36 = vadd.f32 %v3352_v21, %v605_v30 }
 0x265   :  { %v3356_v34 = vpop.eup %3355  ;;  %v600_v35 = vadd.f32 1.0, %v3354_v32 }
 0x266   :  { %v618_v37 = vmul.f32 %v3356_v34, %v599_v22  ;;  %3357 = vpow2.f32 %v2595_v33  ;;  %v610_v42 = vsel %vm609_vm12, %v3352_v21, %v606_v36  ;;  %vm623_vm13 = vweird.f32 %v3356_v34 }
 0x267   :  { %3359 = vrcp.f32 %v600_v35  ;;  %v615_v49 = vsel %vm612_vm14, %v614_v45, %v610_v42  ;;  %vm624_vm0 = vmor %vm622_vm15, %vm623_vm13  ;;  %v643_v0 = vand.u32 2147483648, %v600_v35  ;;  %vm637_vm3 = vweird.f32 %v600_v35 }
 0x268   :  { %v619_v40 = vsub.f32 1.0, %v618_v37  ;;  %v662_v55 = vmul.f32 %v615_v49, %v3791_v59  ;;  %v641_v1 = vand.u32 2147483647, %v600_v35  ;;  %v3239_v49 = vld [vmem:[%s4368_s17 + $0x28] sm:$0xff] }
 0x269   :  { %v644_v7 = vor.u32 1.1754944e-38, %v643_v0  ;;  %943 = vmatpush.bf16.msrb.mxu0 %v3239_v49 }
 0x26a   :  { %v620_v43 = vmul.f32 %v3356_v34, %v619_v40  ;;  %vm642_vm6 = vcmp.eq.f32.partialorder %v641_v1, 8.507059e+37 }
 0x26c   :  { %v3358_v46 = vpop.eup %3357  ;;  %v621_v47 = vadd.f32 %v3356_v34, %v620_v43 }
 0x26d   :  { %v3360_v48 = vpop.eup %3359  ;;  %v601_v51 = vadd.f32 1.0, %v3358_v46 }
 0x26e   :  { %v625_v52 = vsel %vm624_vm0, %v3356_v34, %v621_v47  ;;  %v633_v53 = vmul.f32 %v3360_v48, %v600_v35  ;;  %vm638_vm2 = vweird.f32 %v3360_v48 }
 0x26f   :  { %v630_v54 = vsel %vm627_vm1, %v629_v50, %v625_v52  ;;  %3361 = vrcp.f32 %v601_v51  ;;  %vm639_vm4 = vmor %vm637_vm3, %vm638_vm2  ;;  %v658_v3 = vand.u32 2147483648, %v601_v51  ;;  %v656_v59 = vand.u32 2147483647, %v601_v51 }
 0x270   :  { %v663_v56 = vmul.f32 %v630_v54, %v3797_v4  ;;  %v634_v57 = vsub.f32 1.0, %v633_v53  ;;  %vm652_vm10 = vweird.f32 %v601_v51  ;;  %v3238_v54 = vld [vmem:[%s4368_s17 + $0x20] sm:$0xff] }
 0x271   :  { %v659_v10 = vor.u32 1.1754944e-38, %v658_v3  ;;  %vm657_vm12 = vcmp.eq.f32.partialorder %v656_v59, 8.507059e+37  ;;  %944 = vmatpush.bf16.msrb.mxu0 %v3238_v54  ;;  %v3237_v3 = vld [vmem:[%s4368_s17 + $0x18] sm:$0xff] }
 0x272   :  { %v682_v58 = vpack.c.bf16 %v663_v56, %v662_v55  ;;  %v635_v60 = vmul.f32 %v3360_v48, %v634_v57 }
 0x274   :  { %744 = vmatmul.bf16.vlgmr.msrb.gmra.mxu2 %v682_v58  ;;  %v636_v62 = vadd.f32 %v3360_v48, %v635_v60 }
 0x275   :  { %v3362_v61 = vpop.eup %3361  ;;  %945 = vmatpush.bf16.msrb.mxu0 %v3237_v3 }
 0x276   :  { %v648_v63 = vmul.f32 %v3362_v61, %v601_v51  ;;  %v640_v5 = vsel %vm639_vm4, %v3360_v48, %v636_v62  ;;  %vm653_vm5 = vweird.f32 %v3362_v61 }
 0x277   :  { %v645_v9 = vsel %vm642_vm6, %v644_v7, %v640_v5  ;;  %vm654_vm11 = vmor %vm652_vm10, %vm653_vm5 }
 0x278   :  { %v649_v2 = vsub.f32 1.0, %v648_v63  ;;  %v664_v13 = vmul.f32 %v645_v9, %v3800_v15 }
 0x27a   :  { %v650_v6 = vmul.f32 %v3362_v61, %v649_v2 }
 0x27c   :  { %v651_v4 = vadd.f32 %v3362_v61, %v650_v6 }
 0x27e   :  { %v655_v11 = vsel %vm654_vm11, %v3362_v61, %v651_v4 }
 0x27f   :  { %v660_v12 = vsel %vm657_vm12, %v659_v10, %v655_v11 }
 0x280   :  { %v665_v14 = vmul.f32 %v660_v12, %v3803_v31 }
 0x282   :  { %v683_v16 = vpack.c.bf16 %v665_v14, %v664_v13 }
 0x284   :  { %749 = vmatmul.bf16.gmra.mxu2 %v683_v16 }
 0x2f7   :  { %v745_v17 = vpop.f32.mrf.mxu2 }
 0x2f8   :  { %v3813_v19 = vadd.f32 %v3331_v18, %v745_v17 }
 0x2fa   :  { %v2628_v22 = vmul.f32 -1.442695, %v3813_v19 }
 0x2ff   :  { %v747_v20 = vpop.f32.mrf.mxu2 }
 0x300   :  { %v3815_v21 = vadd.f32 %v3331_v18, %v747_v20 }
 0x302   :  { %v2629_v23 = vmul.f32 -1.442695, %v3815_v21 }
 0x304   :  { %3363 = vpow2.f32 %v2629_v23 }
 0x305   :  { %3365 = vpow2.f32 %v2628_v22 }
 0x307   :  { %v750_v15 = vpop.f32.mrf.mxu2 }
 0x308   :  { %v3819_v24 = vadd.f32 %v3331_v18, %v750_v15 }
 0x30a   :  { %v3364_v25 = vpop.eup %3363  ;;  %v2630_v27 = vmul.f32 -1.442695, %v3819_v24 }
 0x30b   :  { %v3366_v28 = vpop.eup %3365  ;;  %v3822_v29 = vadd.f32 1.0, %v3364_v25 }
 0x30c   :  { %3367 = vpow2.f32 %v2630_v27  ;;  %v3824_v30 = vadd.f32 1.0, %v3366_v28 }
 0x30d   :  { %3369 = vrcp.f32 %v3822_v29  ;;  %vm791_vm15 = vweird.f32 %v3822_v29  ;;  %v795_v63 = vand.u32 2147483647, %v3822_v29  ;;  %v797_v0 = vand.u32 2147483648, %v3822_v29 }
 0x30e   :  { %3371 = vrcp.f32 %v3824_v30  ;;  %vm776_vm4 = vweird.f32 %v3824_v30  ;;  %v780_v7 = vand.u32 2147483647, %v3824_v30  ;;  %v782_v4 = vand.u32 2147483648, %v3824_v30 }
 0x30f   :  { %v752_v31 = vpop.f32.mrf.mxu2  ;;  %v798_v14 = vor.u32 1.1754944e-38, %v797_v0 }
 0x310   :  { %v3826_v32 = vadd.f32 %v3331_v18, %v752_v31  ;;  %v783_v22 = vor.u32 1.1754944e-38, %v782_v4 }
 0x312   :  { %v3368_v33 = vpop.eup %3367  ;;  %v2631_v34 = vmul.f32 -1.442695, %v3826_v32 }
 0x313   :  { %v769_v35 = vadd.f32 1.0, %v3368_v33  ;;  %v3831_v36 = vpop.eup %3369 }
 0x314   :  { %3373 = vpow2.f32 %v2631_v34  ;;  %v3833_v37 = vpop.eup %3371  ;;  %v787_v40 = vmul.f32 %v3831_v36, %v3822_v29  ;;  %vm792_vm0 = vweird.f32 %v3831_v36  ;;  %v3190_v34 = vld [vmem:[%s4369_s5] sm:$0xff] }
 0x315   :  { %3375 = vrcp.f32 %v769_v35  ;;  %v772_v42 = vmul.f32 %v3833_v37, %v3824_v30  ;;  %vm777_vm14 = vweird.f32 %v3833_v37  ;;  %v812_v57 = vand.u32 2147483648, %v769_v35  ;;  %vm3876_vm5 = vmor %vm791_vm15, %vm792_vm0 }
 0x316   :  { %v788_v46 = vsub.f32 1.0, %v787_v40  ;;  %vm806_vm1 = vweird.f32 %v769_v35  ;;  %v810_v60 = vand.u32 2147483647, %v769_v35  ;;  %vm3882_vm6 = vmor %vm776_vm4, %vm777_vm14  ;;  %vm781_vm15 = vcmp.eq.f32.partialorder %v780_v7, 8.507059e+37  ;;  %v3246_v40 = vld [vmem:[%s4372_s19 + $0x20] sm:$0xff] }
 0x317   :  { %v773_v48 = vsub.f32 1.0, %v772_v42  ;;  %v813_v10 = vor.u32 1.1754944e-38, %v812_v57  ;;  %vm842_vm0 = vcmask 261120   ;;  %v2893_v42 = vld [vmem:[%s4415_s0 + $0x34] sm:$0x7]  ;;  %v3242_v57 = vld [vmem:[%s4372_s19] sm:$0xff] }
 0x318   :  { %v789_v51 = vmul.f32 %v3831_v36, %v788_v46  ;;  %vm811_vm10 = vcmp.eq.f32.partialorder %v810_v60, 8.507059e+37  ;;  %v1562_v46 = vunpack.c.l.b16 %v2893_v42 }
 0x319   :  { %v774_v53 = vmul.f32 %v3833_v37, %v773_v48  ;;  %v3244_v48 = vld [vmem:[%s4372_s19 + $0x10] sm:$0xff] }
 0x31a   :  { %v3374_v39 = vpop.eup %3373  ;;  %v790_v58 = vadd.f32 %v3831_v36, %v789_v51 }
 0x31b   :  { %v3376_v41 = vpop.eup %3375  ;;  %v770_v43 = vadd.f32 1.0, %v3374_v39  ;;  %v775_v62 = vadd.f32 %v3833_v37, %v774_v53  ;;  %v3247_v39 = vld [vmem:[%s4372_s19 + $0x28] sm:$0xff] }
 0x31c   :  { %v802_v45 = vmul.f32 %v3376_v41, %v769_v35  ;;  %vm807_vm13 = vweird.f32 %v3376_v41  ;;  %v794_v12 = vsel %vm3876_vm5, %v3831_v36, %v790_v58 }
 0x31d   :  { %3377 = vrcp.f32 %v770_v43  ;;  %vm3860_vm2 = vmor %vm806_vm1, %vm807_vm13  ;;  %v827_v2 = vand.u32 2147483648, %v770_v43  ;;  %v825_v59 = vand.u32 2147483647, %v770_v43  ;;  %vm821_vm11 = vweird.f32 %v770_v43 }
 0x31e   :  { %v803_v47 = vsub.f32 1.0, %v802_v45  ;;  %v779_v18 = vsel %vm3882_vm6, %v3833_v37, %v775_v62  ;;  %vm796_vm13 = vcmp.eq.f32.partialorder %v795_v63, 8.507059e+37  ;;  %v3249_v37 = vld [vmem:[%s4372_s19 + $0x38] sm:$0xff] }
 0x31f   :  { %v828_v17 = vor.u32 1.1754944e-38, %v827_v2  ;;  %vm826_vm14 = vcmp.eq.f32.partialorder %v825_v59, 8.507059e+37  ;;  %v799_v23 = vsel %vm796_vm13, %v798_v14, %v794_v12  ;;  %v784_v28 = vsel %vm781_vm15, %v783_v22, %v779_v18  ;;  %1132 = vmatpush.bf16.msra.mxu2 %v3249_v37 }
 0x320   :  { %v804_v50 = vmul.f32 %v3376_v41, %v803_v47  ;;  %v832_v29 = vmul.f32 %v799_v23, %v3815_v21  ;;  %v831_v31 = vmul.f32 %v784_v28, %v3813_v19  ;;  %v3235_v21 = vld [vmem:[%s4368_s17 + $0x8] sm:$0xff]  ;;  %v3234_v19 = vld [vmem:[%s4368_s17] sm:$0xff] }
 0x321   :  { %v3333_v28 = vld [vmem:[%s4371_s20] ss:$0 sm:$0xff] }
 0x322   :  { %v805_v55 = vadd.f32 %v3376_v41, %v804_v50  ;;  %v835_v33 = vpack.c.bf16 %v832_v29, %v831_v31  ;;  %v1566_v50 = vpack.c.b16 %v1562_v46, %v1562_v46 }
 0x323   :  { %v3378_v52 = vpop.eup %3377  ;;  %1133 = vmatpush.bf16.msra.mxu2 %v3248_v38 }
 0x324   :  { %v817_v56 = vmul.f32 %v3378_v52, %v770_v43  ;;  %v809_v5 = vsel %vm3860_vm2, %v3376_v41, %v805_v55  ;;  %vm822_vm3 = vweird.f32 %v3378_v52  ;;  %v3245_v41 = vld [vmem:[%s4372_s19 + $0x18] sm:$0xff]  ;;  %v1012_v43 = vpop.f32.mrf.mxu1  ;;  %v1571_v55 = vsel %vm551_vm7, %v1566_v50, 0 }
 0x325   :  { %v814_v16 = vsel %vm811_vm10, %v813_v10, %v809_v5  ;;  %vm823_vm12 = vmor %vm821_vm11, %vm822_vm3 }
 0x326   :  { %v818_v61 = vsub.f32 1.0, %v817_v56  ;;  %v833_v25 = vmul.f32 %v814_v16, %v3819_v24  ;;  %v3236_v24 = vld [vmem:[%s4368_s17 + $0x10] sm:$0xff] }
 0x327   :  { %946 = vmatpush.bf16.msrb.mxu0 %v3236_v24  ;;  %1134 = vmatpush.bf16.msra.mxu2 %v3247_v39 }
 0x328   :  { %v819_v6 = vmul.f32 %v3378_v52, %v818_v61 }
 0x32a   :  { %v820_v13 = vadd.f32 %v3378_v52, %v819_v6 }
 0x32b   :  { %947 = vmatpush.bf16.msrb.mxu0 %v3235_v21  ;;  %1135 = vmatpush.bf16.msra.mxu2 %v3246_v40 }
 0x32c   :  { %v824_v20 = vsel %vm823_vm12, %v3378_v52, %v820_v13  ;;  %v3243_v52 = vld [vmem:[%s4372_s19 + $0x8] sm:$0xff]  ;;  %v1014_v53 = vpop.f32.mrf.mxu1 }
 0x32d   :  { %v829_v15 = vsel %vm826_vm14, %v828_v17, %v824_v20 }
 0x32e   :  { %v834_v27 = vmul.f32 %v829_v15, %v3826_v32 }
 0x32f   :  { %948 = vmatpush.bf16.msrb.mxu0 %v3234_v19  ;;  %1136 = vmatpush.bf16.msra.mxu2 %v3245_v41 }
 0x330   :  { %v836_v30 = vpack.c.bf16 %v834_v27, %v833_v25 }
 0x332   :  { %852 = vmatpush.bf16.msra.mxu3 %v836_v30 }
 0x333   :  { %1137 = vmatpush.bf16.msra.mxu2 %v3244_v48 }
 0x336   :  { %853 = vmatpush.bf16.msra.mxu3 %v835_v33 }
 0x337   :  { %1138 = vmatpush.bf16.msra.mxu2 %v3243_v52 }
 0x339   :  { %2636 = vmatmul.msk.bf16.vlgmr.msra.gmra.mxu3 %vm842_vm0, %v3190_v34 }
 0x33b   :  { %1139 = vmatpush.bf16.msra.mxu2 %v3242_v57 }
 0x33f   :  { %1577 = vmatpush.bf16.msrb.mxu2 %v1571_v55 }
 0x3bc   :  { %v855_v32 = vpop.f32.mrf.mxu3 }
 0x3c4   :  { %v857_v35 = vpop.f32.mrf.mxu3 }
 0x3c5   :  { %v876_v36 = vpack.c.bf16 %v857_v35, %v855_v32 }
 0x3c7   :  { %949 = vmatmul.bf16.vlgmr.msrb.gmra.mxu0 %v876_v36 }
 0x444   :  { %v950_v45 = vpop.f32.mrf.mxu0 }
 0x445   :  { %v1013_v47 = vadd.f32 %v1012_v43, %v950_v45 }
 0x447   :  { %v1021_v49 = vadd.f32 %v3332_v44, %v1013_v47 }
 0x449   :  { %v2701_v51 = vmul.f32 -1.442695, %v1021_v49 }
 0x44b   :  { %3379 = vpow2.f32 %v2701_v51 }
 0x44c   :  { %v952_v54 = vpop.f32.mrf.mxu0 }
 0x44d   :  { %v1015_v56 = vadd.f32 %v1014_v53, %v952_v54  ;;  %v3451_v53 = vld [vmem:[%s4414_s9] sm:$0xff] }
 0x44f   :  { %v1022_v58 = vadd.f32 %v3332_v44, %v1015_v56 }
 0x451   :  { %v3380_v60 = vpop.eup %3379  ;;  %v2702_v61 = vmul.f32 -1.442695, %v1022_v58 }
 0x452   :  { %v1029_v62 = vadd.f32 1.0, %v3380_v60 }
 0x453   :  { %3381 = vpow2.f32 %v2702_v61  ;;  %v3452_v61 = vld [vmem:[%s4414_s9 + $0x8] sm:$0xff] }
 0x454   :  { %3383 = vrcp.f32 %v1029_v62  ;;  %v1042_v4 = vand.u32 2147483648, %v1029_v62  ;;  %vm1036_vm1 = vweird.f32 %v1029_v62  ;;  %v1040_v9 = vand.u32 2147483647, %v1029_v62 }
 0x456   :  { %v1043_v16 = vor.u32 1.1754944e-38, %v1042_v4  ;;  %vm1041_vm4 = vcmp.eq.f32.partialorder %v1040_v9, 8.507059e+37 }
 0x459   :  { %v3382_v63 = vpop.eup %3381 }
 0x45a   :  { %v3384_v0 = vpop.eup %3383  ;;  %v1030_v1 = vadd.f32 1.0, %v3382_v63 }
 0x45b   :  { %v1032_v2 = vmul.f32 %v3384_v0, %v1029_v62  ;;  %vm1037_vm7 = vweird.f32 %v3384_v0 }
 0x45c   :  { %3385 = vrcp.f32 %v1030_v1  ;;  %vm1038_vm2 = vmor %vm1036_vm1, %vm1037_vm7  ;;  %v1057_v11 = vand.u32 2147483648, %v1030_v1  ;;  %v1055_v14 = vand.u32 2147483647, %v1030_v1  ;;  %vm1051_vm5 = vweird.f32 %v1030_v1 }
 0x45d   :  { %v1033_v3 = vsub.f32 1.0, %v1032_v2 }
 0x45e   :  { %v1058_v20 = vor.u32 1.1754944e-38, %v1057_v11  ;;  %vm1056_vm10 = vcmp.eq.f32.partialorder %v1055_v14, 8.507059e+37 }
 0x45f   :  { %v1034_v5 = vmul.f32 %v3384_v0, %v1033_v3 }
 0x461   :  { %v1035_v59 = vadd.f32 %v3384_v0, %v1034_v5 }
 0x462   :  { %v3386_v6 = vpop.eup %3385 }
 0x463   :  { %v1047_v7 = vmul.f32 %v3386_v6, %v1030_v1  ;;  %v1039_v12 = vsel %vm1038_vm2, %v3384_v0, %v1035_v59  ;;  %vm1052_vm3 = vweird.f32 %v3386_v6 }
 0x464   :  { %v1044_v18 = vsel %vm1041_vm4, %v1043_v16, %v1039_v12  ;;  %vm1053_vm6 = vmor %vm1051_vm5, %vm1052_vm3 }
 0x465   :  { %v1048_v10 = vsub.f32 1.0, %v1047_v7  ;;  %v1061_v15 = vmul.f32 %v1044_v18, %v1021_v49 }
 0x467   :  { %v1049_v13 = vmul.f32 %v3386_v6, %v1048_v10 }
 0x469   :  { %v1050_v17 = vadd.f32 %v3386_v6, %v1049_v13 }
 0x46b   :  { %v1054_v22 = vsel %vm1053_vm6, %v3386_v6, %v1050_v17 }
 0x46c   :  { %v1059_v23 = vsel %vm1056_vm10, %v1058_v20, %v1054_v22 }
 0x46d   :  { %v1062_v25 = vmul.f32 %v1059_v23, %v1022_v58 }
 0x46f   :  { %v1079_v27 = vpack.c.bf16 %v1062_v25, %v1061_v15 }
 0x471   :  { %1140 = vmatmul.bf16.vlgmr.msra.gmra.mxu2 %v1079_v27 }
 0x4f4   :  { %v1141_v29 = vpop.f32.mrf.mxu2 }
 0x4f5   :  { %v1142_v30 = vadd.f32 %v3333_v28, %v1141_v29  ;;  %v3328_v29 = vld [vmem:[%s4416_s1 + $0x1] ss:$0 sm:$0xff] }
 0x4f7   :  { %v2735_v31 = vmul.f32 -1.442695, %v1142_v30 }
 0x4f9   :  { %3387 = vpow2.f32 %v2735_v31 }
 0x4fc   :  { %v1143_v33 = vpop.f32.mrf.mxu2 }
 0x4fd   :  { %v1144_v34 = vadd.f32 %v3333_v28, %v1143_v33  ;;  %v3265_v33 = vld [vmem:[%s4424_s29 + $0x78] sm:$0xff] }
 0x4fe   :  { %1367 = vmatpush.bf16.msrb.mxu1 %v3265_v33 }
 0x4ff   :  { %v3388_v24 = vpop.eup %3387  ;;  %v2736_v21 = vmul.f32 -1.442695, %v1144_v34 }
 0x500   :  { %v1152_v19 = vadd.f32 1.0, %v3388_v24  ;;  %v3264_v24 = vld [vmem:[%s4424_s29 + $0x70] sm:$0xff] }
 0x501   :  { %3389 = vpow2.f32 %v2736_v21  ;;  %v3329_v21 = vld [vmem:[%s4417_s2 + $0x1] ss:$0 sm:$0xff] }
 0x502   :  { %3391 = vrcp.f32 %v1152_v19  ;;  %v1165_v39 = vand.u32 2147483648, %v1152_v19  ;;  %v1163_v41 = vand.u32 2147483647, %v1152_v19  ;;  %vm1159_vm12 = vweird.f32 %v1152_v19  ;;  %1368 = vmatpush.bf16.msrb.mxu1 %v3264_v24  ;;  %v3283_v24 = vld [vmem:[%s4367_s14 + $0x70] sm:$0xff] }
 0x504   :  { %v1166_v44 = vor.u32 1.1754944e-38, %v1165_v39  ;;  %vm1164_vm14 = vcmp.eq.f32.partialorder %v1163_v41, 8.507059e+37  ;;  %v3273_v41 = vld [vmem:[%s4423_s28 + $0x78] sm:$0xff] }
 0x507   :  { %v3390_v32 = vpop.eup %3389 }
 0x508   :  { %v3392_v35 = vpop.eup %3391  ;;  %v1153_v36 = vadd.f32 1.0, %v3390_v32 }
 0x509   :  { %v1155_v37 = vmul.f32 %v3392_v35, %v1152_v19  ;;  %vm1160_vm11 = vweird.f32 %v3392_v35 }
 0x50a   :  { %3393 = vrcp.f32 %v1153_v36  ;;  %vm1161_vm13 = vmor %vm1159_vm12, %vm1160_vm11  ;;  %v1180_v50 = vand.u32 2147483648, %v1153_v36  ;;  %v1178_v52 = vand.u32 2147483647, %v1153_v36  ;;  %vm1174_vm7 = vweird.f32 %v1153_v36 }
 0x50b   :  { %v1156_v38 = vsub.f32 1.0, %v1155_v37  ;;  %v3263_v37 = vld [vmem:[%s4424_s29 + $0x68] sm:$0xff] }
 0x50c   :  { %v1181_v56 = vor.u32 1.1754944e-38, %v1180_v50  ;;  %vm1179_vm2 = vcmp.eq.f32.partialorder %v1178_v52, 8.507059e+37  ;;  %1369 = vmatpush.bf16.msrb.mxu1 %v3263_v37  ;;  %v3254_v50 = vld [vmem:[%s4422_s25 + $0x60] sm:$0xff]  ;;  %v3253_v52 = vld [vmem:[%s4422_s25 + $0x58] sm:$0xff] }
 0x50d   :  { %v1157_v40 = vmul.f32 %v3392_v35, %v1156_v38 }
 0x50f   :  { %v1158_v42 = vadd.f32 %v3392_v35, %v1157_v40  ;;  %v3257_v40 = vld [vmem:[%s4422_s25 + $0x78] sm:$0xff] }
 0x510   :  { %v3394_v43 = vpop.eup %3393 }
 0x511   :  { %v1162_v45 = vsel %vm1161_vm13, %v3392_v35, %v1158_v42  ;;  %v1170_v46 = vmul.f32 %v3394_v43, %v1153_v36  ;;  %vm1175_vm15 = vweird.f32 %v3394_v43  ;;  %v3276_v35 = vld [vmem:[%s4415_s0 + $0x2c] sm:$0xff] }
 0x512   :  { %v1167_v47 = vsel %vm1164_vm14, %v1166_v44, %v1162_v45  ;;  %vm1176_vm1 = vmor %vm1174_vm7, %vm1175_vm15  ;;  %1578 = vmatpush.bf16.msrb.mxu2 %v3276_v35  ;;  %v3256_v44 = vld [vmem:[%s4422_s25 + $0x70] sm:$0xff]  ;;  %v3281_v35 = vld [vmem:[%s4367_s14 + $0x60] sm:$0xff] }
 0x513   :  { %v1184_v48 = vmul.f32 %v1167_v47, %v1142_v30  ;;  %v1171_v49 = vsub.f32 1.0, %v1170_v46  ;;  %v3272_v45 = vld [vmem:[%s4423_s28 + $0x70] sm:$0xff]  ;;  %v3453_v46 = vld [vmem:[%s4418_s8] sm:$0xff] }
 0x514   :  { %v3454_v47 = vld [vmem:[%s4419_s4] sm:$0xff] }
 0x515   :  { %v1172_v51 = vmul.f32 %v3394_v43, %v1171_v49  ;;  %v3946_v54 = vadd.f32 %v3451_v53, %v1184_v48  ;;  %v3255_v48 = vld [vmem:[%s4422_s25 + $0x68] sm:$0xff]  ;;  %v3269_v53 = vld [vmem:[%s4423_s28 + $0x58] sm:$0xff] }
 0x516   :  { %v3271_v49 = vld [vmem:[%s4423_s28 + $0x68] sm:$0xff] }
 0x517   :  { %v1173_v55 = vadd.f32 %v3394_v43, %v1172_v51  ;;  %1192 = vadd.xlane.f32.xlu2 %v3946_v54  ;;  %v3270_v51 = vld [vmem:[%s4423_s28 + $0x60] sm:$0xff] }
 0x519   :  { %v1177_v57 = vsel %vm1176_vm1, %v3394_v43, %v1173_v55  ;;  %v3262_v43 = vld [vmem:[%s4424_s29 + $0x60] sm:$0xff]  ;;  %v3252_v55 = vld [vmem:[%s4422_s25 + $0x50] sm:$0xff] }
 0x51a   :  { %v1182_v58 = vsel %vm1179_vm2, %v1181_v56, %v1177_v57  ;;  %1370 = vmatpush.bf16.msrb.mxu1 %v3262_v43  ;;  %v3455_v56 = vld [vmem:[%s4418_s8 + $0x8] sm:$0xff] }
 0x51b   :  { %v1185_v60 = vmul.f32 %v1182_v58, %v1144_v34  ;;  %v3456_v57 = vld [vmem:[%s4419_s4 + $0x8] sm:$0xff] }
 0x51c   :  { %v3251_v58 = vld [vmem:[%s4422_s25 + $0x48] sm:$0xff] }
 0x51d   :  { %v3952_v62 = vadd.f32 %v3452_v61, %v1185_v60  ;;  %v3250_v60 = vld [vmem:[%s4422_s25 + $0x40] sm:$0xff]  ;;  %v3268_v61 = vld [vmem:[%s4423_s28 + $0x50] sm:$0xff] }
 0x51f   :  { %1194 = vadd.xlane.f32.xlu2 %v3952_v62 }
 0x58a   :  { %v1193_v63 = vpop.xlane.xlu2 %1192 }
 0x58b   :  { %v1196_v0 = vmul.f32 %v1193_v63, %v3608_v8  ;;  %v3275_v63 = vld [vmem:[%s4415_s0 + $0x24] sm:$0xff] }
 0x58c   :  { %1579 = vmatpush.bf16.msrb.mxu2 %v3275_v63 }
 0x58d   :  { %v1198_v1 = vsub.f32 %v3946_v54, %v1196_v0  ;;  %v3261_v0 = vld [vmem:[%s4424_s29 + $0x58] sm:$0xff] }
 0x58e   :  { %1371 = vmatpush.bf16.msrb.mxu1 %v3261_v0 }
 0x58f   :  { %v1200_v2 = vmul.f32 %v1198_v1, %v1198_v1 }
 0x591   :  { %1202 = vadd.xlane.f32.xlu0 %v1200_v2  ;;  %v3274_v2 = vld [vmem:[%s4415_s0 + $0x1c] sm:$0xff] }
 0x592   :  { %v1195_v3 = vpop.xlane.xlu2 %1194  ;;  %1580 = vmatpush.bf16.msrb.mxu2 %v3274_v2 }
 0x593   :  { %v1197_v5 = vmul.f32 %v1195_v3, %v3608_v8  ;;  %v3260_v3 = vld [vmem:[%s4424_s29 + $0x50] sm:$0xff] }
 0x594   :  { %1372 = vmatpush.bf16.msrb.mxu1 %v3260_v3 }
 0x595   :  { %v1199_v6 = vsub.f32 %v3952_v62, %v1197_v5  ;;  %v3266_v5 = vld [vmem:[%s4423_s28 + $0x40] sm:$0xff] }
 0x597   :  { %v1201_v59 = vmul.f32 %v1199_v6, %v1199_v6 }
 0x599   :  { %1204 = vadd.xlane.f32.xlu1 %v1201_v59  ;;  %v3292_v59 = vld [vmem:[%s4420_s11 + $0x78] sm:$0xff] }
 0x604   :  { %v1203_v7 = vpop.xlane.xlu0 %1202 }
 0x605   :  { %v1206_v4 = vmul.f32 %v1203_v7, %v3608_v8  ;;  %v3258_v7 = vld [vmem:[%s4424_s29 + $0x40] sm:$0xff] }
 0x607   :  { %v1208_v9 = vadd.f32 1e-05, %v1206_v4  ;;  %v3291_v4 = vld [vmem:[%s4420_s11 + $0x70] sm:$0xff] }
 0x609   :  { %3395 = vrsqrt.f32 %v1208_v9  ;;  %vm1216_vm4 = vweird.f32 %v1208_v9 }
 0x60c   :  { %v1205_v10 = vpop.xlane.xlu1 %1204 }
 0x60d   :  { %v1207_v11 = vmul.f32 %v1205_v10, %v3608_v8  ;;  %v3458_v10 = vld [vmem:[%s4425_s12 + $0x8] sm:$0xff]  ;;  %s4438_s12 = sld [smem:[#allocation16_spill]] }
 0x60f   :  { %v3396_v12 = vpop.eup %3395  ;;  %v1209_v13 = vadd.f32 1e-05, %v1207_v11  ;;  %v3289_v11 = vld [vmem:[%s4420_s11 + $0x60] sm:$0xff] }
 0x610   :  { %v1211_v14 = vmul.f32 %v3396_v12, %v1208_v9  ;;  %vm1217_vm3 = vweird.f32 %v3396_v12  ;;  %v3290_v9 = vld [vmem:[%s4420_s11 + $0x68] sm:$0xff] }
 0x611   :  { %3397 = vrsqrt.f32 %v1209_v13  ;;  %vm1218_vm5 = vmor %vm1216_vm4, %vm1217_vm3  ;;  %vm1226_vm10 = vweird.f32 %v1209_v13 }
 0x612   :  { %v1212_v16 = vmul.f32 %v3396_v12, %v1211_v14  ;;  %v3287_v14 = vld [vmem:[%s4420_s11 + $0x50] sm:$0xff] }
 0x614   :  { %v1213_v17 = vmul.f32 0.5, %v1212_v16 }
 0x616   :  { %v1214_v18 = vsub.f32 1.5, %v1213_v17  ;;  %v3286_v17 = vld [vmem:[%s4420_s11 + $0x48] sm:$0xff] }
 0x617   :  { %v3398_v20 = vpop.eup %3397 }
 0x618   :  { %v1215_v22 = vmul.f32 %v3396_v12, %v1214_v18  ;;  %v1221_v23 = vmul.f32 %v3398_v20, %v1209_v13  ;;  %vm1227_vm6 = vweird.f32 %v3398_v20  ;;  %v3288_v13 = vld [vmem:[%s4420_s11 + $0x58] sm:$0xff]  ;;  %v3285_v18 = vld [vmem:[%s4420_s11 + $0x40] sm:$0xff]  ;;  %s4440_s11 = sld [smem:[#allocation15_spill]] }
 0x619   :  { %vm1228_vm11 = vmor %vm1226_vm10, %vm1227_vm6 }
 0x61a   :  { %v1222_v15 = vmul.f32 %v3398_v20, %v1221_v23  ;;  %v1219_v25 = vsel %vm1218_vm5, %v3396_v12, %v1215_v22  ;;  %v3459_v12 = vld [vmem:[%s4421_s7 + $0x8] sm:$0xff] }
 0x61b   :  { %v1230_v30 = vmul.f32 %v1219_v25, %v1198_v1  ;;  %v3267_v1 = vld [vmem:[%s4423_s28 + $0x48] sm:$0xff] }
 0x61c   :  { %v1223_v27 = vmul.f32 0.5, %v1222_v15 }
 0x61d   :  { %v1235_v32 = vmul.f32 %v3328_v29, %v1230_v30 }
 0x61e   :  { %v1224_v28 = vsub.f32 1.5, %v1223_v27 }
 0x61f   :  { %v1240_v38 = vadd.f32 %v3329_v21, %v1235_v32 }
 0x620   :  { %v1225_v31 = vmul.f32 %v3398_v20, %v1224_v28 }
 0x622   :  { %v1229_v34 = vsel %vm1228_vm11, %v3398_v20, %v1225_v31 }
 0x623   :  { %v1231_v19 = vmul.f32 %v1229_v34, %v1199_v6  ;;  %v3457_v6 = vld [vmem:[%s4421_s7] sm:$0xff]  ;;  %v3284_v34 = vld [vmem:[%s4367_s14 + $0x78] sm:$0xff]  ;;  %s4439_s7 = sld [smem:[#allocation14_spill]] }
 0x624   :  { %2906 = vmatmul.msk.bf16.vlgmr.msrb.gmra.mxu2 %vm544_vm9, %v3457_v6 }
 0x625   :  { %v1236_v36 = vmul.f32 %v3328_v29, %v1231_v19 }
 0x627   :  { %v1241_v39 = vadd.f32 %v3329_v21, %v1236_v36  ;;  %v3282_v21 = vld [vmem:[%s4367_s14 + $0x68] sm:$0xff] }
 0x629   :  { %v3985_v42 = vpack.c.bf16 %v1241_v39, %v1240_v38  ;;  %v3280_v39 = vld [vmem:[%s4367_s14 + $0x58] sm:$0xff] }
 0x62b   :  { %1250 = vmatpush.bf16.msrb.mxu3 %v3985_v42  ;;  %1271 = vmatpush.bf16.msra.mxu0 %v3985_v42 }
 0x62e   :  { %2739 = vmatmul.msk.bf16.vlgmr.msrb.gmra.mxu3 %vm176_vm8, %v3453_v46  ;;  %2741 = vmatmul.msk.bf16.vlgmr.msra.gmra.mxu0 %vm176_vm8, %v3454_v47 }
 0x62f   :  { %1434 = vmatpush.bf16.msra.mxu3 %v3257_v40  ;;  %1518 = vmatpush.bf16.msrb.mxu0 %v3273_v41  ;;  %v3334_v41 = vld [vmem:[%s4365_s13 + $0x1] ss:$0 sm:$0xff] }
 0x633   :  { %1435 = vmatpush.bf16.msra.mxu3 %v3256_v44  ;;  %1519 = vmatpush.bf16.msrb.mxu0 %v3272_v45  ;;  %v3279_v44 = vld [vmem:[%s4367_s14 + $0x50] sm:$0xff] }
 0x634   :  { %2907 = vmatmul.msk.bf16.gmra.mxu2 %vm544_vm9, %v3459_v12 }
 0x637   :  { %1436 = vmatpush.bf16.msra.mxu3 %v3255_v48  ;;  %1520 = vmatpush.bf16.msrb.mxu0 %v3271_v49 }
 0x63b   :  { %1437 = vmatpush.bf16.msra.mxu3 %v3254_v50  ;;  %1521 = vmatpush.bf16.msrb.mxu0 %v3270_v51  ;;  %v3278_v51 = vld [vmem:[%s4367_s14 + $0x48] sm:$0xff] }
 0x63e   :  { %2740 = vmatmul.msk.bf16.gmra.mxu3 %vm176_vm8, %v3455_v56  ;;  %2742 = vmatmul.msk.bf16.gmra.mxu0 %vm176_vm8, %v3456_v57 }
 0x63f   :  { %1438 = vmatpush.bf16.msra.mxu3 %v3253_v52  ;;  %1522 = vmatpush.bf16.msrb.mxu0 %v3269_v53 }
 0x643   :  { %1439 = vmatpush.bf16.msra.mxu3 %v3252_v55  ;;  %1523 = vmatpush.bf16.msrb.mxu0 %v3268_v61  ;;  %v3277_v55 = vld [vmem:[%s4367_s14 + $0x40] sm:$0xff] }
 0x647   :  { %1440 = vmatpush.bf16.msra.mxu3 %v3251_v58  ;;  %1524 = vmatpush.bf16.msrb.mxu0 %v3267_v1 }
 0x64b   :  { %1441 = vmatpush.bf16.msra.mxu3 %v3250_v60  ;;  %1525 = vmatpush.bf16.msrb.mxu0 %v3266_v5 }
 0x64e   :  { %1442 = vmatmul.bf16.vlgmr.msra.gmra.mxu3 %v3755_v26  ;;  %v3259_v26 = vld [vmem:[%s4424_s29 + $0x48] sm:$0xff] }
 0x64f   :  { %1373 = vmatpush.bf16.msrb.mxu1 %v3259_v26  ;;  %2017 = vmatpush.bf16.msra.mxu0 %v3292_v59 }
 0x653   :  { %1374 = vmatpush.bf16.msrb.mxu1 %v3258_v7  ;;  %2018 = vmatpush.bf16.msra.mxu0 %v3291_v4 }
 0x657   :  { %2019 = vmatpush.bf16.msra.mxu0 %v3290_v9  ;;  %1757 = vmatpush.bf16.msra.mxu1 %v3284_v34 }
 0x65b   :  { %2020 = vmatpush.bf16.msra.mxu0 %v3289_v11  ;;  %1758 = vmatpush.bf16.msra.mxu1 %v3283_v24 }
 0x65e   :  { %1447 = vmatmul.bf16.gmra.mxu3 %v3458_v10 }
 0x65f   :  { %2021 = vmatpush.bf16.msra.mxu0 %v3288_v13  ;;  %1759 = vmatpush.bf16.msra.mxu1 %v3282_v21 }
 0x663   :  { %2022 = vmatpush.bf16.msra.mxu0 %v3287_v14  ;;  %1760 = vmatpush.bf16.msra.mxu1 %v3281_v35 }
 0x667   :  { %2023 = vmatpush.bf16.msra.mxu0 %v3286_v17  ;;  %1761 = vmatpush.bf16.msra.mxu1 %v3280_v39 }
 0x66b   :  { %2024 = vmatpush.bf16.msra.mxu0 %v3285_v18  ;;  %1762 = vmatpush.bf16.msra.mxu1 %v3279_v44 }
 0x66f   :  { %1763 = vmatpush.bf16.msra.mxu1 %v3278_v51 }
 0x673   :  { %1764 = vmatpush.bf16.msra.mxu1 %v3277_v55 }
 0x6a7   :  { %v1582_v36 = vpop.f32.mrf.mxu2 }
 0x6ab   :  { %v1273_v16 = vpop.f32.mrf.mxu0 }
 0x6af   :  { %v1584_v47 = vpop.f32.mrf.mxu2 }
 0x6b1   :  { %v1252_v20 = vpop.f32.mrf.mxu3 }
 0x6b3   :  { %v1275_v22 = vpop.f32.mrf.mxu0 }
 0x6b4   :  { %v1283_v23 = vpack.c.bf16 %v1275_v22, %v1273_v16 }
 0x6b6   :  { %1526 = vmatmul.bf16.vlgmr.msrb.gmra.mxu0 %v1283_v23 }
 0x6b7   :  { %v1587_v2 = vpop.f32.mrf.mxu2 }
 0x6b9   :  { %v1254_v15 = vpop.f32.mrf.mxu3 }
 0x6ba   :  { %v1262_v25 = vpack.c.bf16 %v1254_v15, %v1252_v20 }
 0x6bb   :  { %v1278_v27 = vpop.f32.mrf.mxu0 }
 0x6bc   :  { %1375 = vmatmul.bf16.vlgmr.msrb.gmra.mxu1 %v1262_v25 }
 0x6bf   :  { %v1589_v16 = vpop.f32.mrf.mxu2 }
 0x6c1   :  { %v1257_v28 = vpop.f32.mrf.mxu3 }
 0x6c3   :  { %v1280_v29 = vpop.f32.mrf.mxu0 }
 0x6c4   :  { %v1284_v30 = vpack.c.bf16 %v1280_v29, %v1278_v27 }
 0x6c6   :  { %1531 = vmatmul.bf16.gmra.mxu0 %v1284_v30 }
 0x6c9   :  { %v1259_v31 = vpop.f32.mrf.mxu3 }
 0x6ca   :  { %v1263_v33 = vpack.c.bf16 %v1259_v31, %v1257_v28 }
 0x6cc   :  { %1380 = vmatmul.bf16.gmra.mxu1 %v1263_v33 }
 0x6d1   :  { %v1443_v19 = vpop.f32.mrf.mxu3 }
 0x6d6   :  { %2025 = vmatmul.bf16.vlgmr.msra.gmra.mxu0 %v3985_v42 }
 0x6d9   :  { %v1445_v42 = vpop.f32.mrf.mxu3 }
 0x6e1   :  { %v1448_v56 = vpop.f32.mrf.mxu3 }
 0x6e9   :  { %v1450_v26 = vpop.f32.mrf.mxu3 }
 0x733   :  { %v1527_v32 = vpop.f32.mrf.mxu0 }
 0x739   :  { %v1376_v37 = vpop.f32.mrf.mxu1 }
 0x73a   :  { %v1444_v38 = vadd.f32 %v1443_v19, %v1376_v37 }
 0x73b   :  { %v1529_v45 = vpop.f32.mrf.mxu0 }
 0x73c   :  { %v1537_v40 = vadd.f32 %v1527_v32, %v1444_v38 }
 0x73e   :  { %v1592_v43 = vadd.f32 %v1582_v36, %v1537_v40 }
 0x740   :  { %v4126_v46 = vadd.f32 %v3334_v41, %v1592_v43 }
 0x741   :  { %v1378_v48 = vpop.f32.mrf.mxu1 }
 0x742   :  { %v2909_v49 = vmul.f32 -1.442695, %v4126_v46  ;;  %v1446_v50 = vadd.f32 %v1445_v42, %v1378_v48 }
 0x743   :  { %v1532_v58 = vpop.f32.mrf.mxu0 }
 0x744   :  { %3399 = vpow2.f32 %v2909_v49  ;;  %v1538_v52 = vadd.f32 %v1529_v45, %v1446_v50 }
 0x746   :  { %v1593_v53 = vadd.f32 %v1584_v47, %v1538_v52 }
 0x748   :  { %v4135_v57 = vadd.f32 %v3334_v41, %v1593_v53 }
 0x749   :  { %v1381_v60 = vpop.f32.mrf.mxu1 }
 0x74a   :  { %v3400_v61 = vpop.eup %3399  ;;  %v2910_v63 = vmul.f32 -1.442695, %v4135_v57  ;;  %v1449_v0 = vadd.f32 %v1448_v56, %v1381_v60 }
 0x74b   :  { %v1617_v1 = vadd.f32 1.0, %v3400_v61  ;;  %v1534_v12 = vpop.f32.mrf.mxu0 }
 0x74c   :  { %3401 = vpow2.f32 %v2910_v63  ;;  %v1539_v3 = vadd.f32 %v1532_v58, %v1449_v0 }
 0x74d   :  { %3403 = vrcp.f32 %v1617_v1  ;;  %v1632_v30 = vand.u32 2147483648, %v1617_v1  ;;  %vm1626_vm12 = vweird.f32 %v1617_v1  ;;  %v1630_v31 = vand.u32 2147483647, %v1617_v1 }
 0x74e   :  { %v1594_v5 = vadd.f32 %v1587_v2, %v1539_v3 }
 0x74f   :  { %v1633_v32 = vor.u32 1.1754944e-38, %v1632_v30  ;;  %vm1631_vm15 = vcmp.eq.f32.partialorder %v1630_v31, 8.507059e+37  ;;  %v3300_v31 = vld [vmem:[%s4368_s17 + $0x78] sm:$0xff] }
 0x750   :  { %v4138_v6 = vadd.f32 %v3334_v41, %v1594_v5  ;;  %1955 = vmatpush.bf16.msrb.mxu3 %v3300_v31  ;;  %v3308_v31 = vld [vmem:[%s4372_s19 + $0x78] sm:$0xff] }
 0x751   :  { %v1383_v59 = vpop.f32.mrf.mxu1  ;;  %2149 = vmatpush.bf16.msrb.mxu1 %v3308_v31 }
 0x752   :  { %v3402_v7 = vpop.eup %3401  ;;  %v1451_v4 = vadd.f32 %v1450_v26, %v1383_v59  ;;  %v2911_v9 = vmul.f32 -1.442695, %v4138_v6 }
 0x753   :  { %v3404_v10 = vpop.eup %3403  ;;  %v1618_v11 = vadd.f32 1.0, %v3402_v7 }
 0x754   :  { %v1622_v13 = vmul.f32 %v3404_v10, %v1617_v1  ;;  %v1540_v14 = vadd.f32 %v1534_v12, %v1451_v4  ;;  %3405 = vpow2.f32 %v2911_v9  ;;  %vm1627_vm9 = vweird.f32 %v3404_v10  ;;  %v3335_v4 = vld [vmem:[%s4366_s15 + $0x1] ss:$0 sm:$0xff]  ;;  %s4443_s15 = sld [smem:[#allocation18_spill]] }
 0x755   :  { %3407 = vrcp.f32 %v1618_v11  ;;  %vm1628_vm13 = vmor %vm1626_vm12, %vm1627_vm9  ;;  %v1647_v34 = vand.u32 2147483648, %v1618_v11  ;;  %v1645_v19 = vand.u32 2147483647, %v1618_v11  ;;  %vm1641_vm7 = vweird.f32 %v1618_v11 }
 0x756   :  { %v1623_v17 = vsub.f32 1.0, %v1622_v13  ;;  %v1595_v18 = vadd.f32 %v1589_v16, %v1540_v14 }
 0x757   :  { %v1648_v39 = vor.u32 1.1754944e-38, %v1647_v34  ;;  %vm1646_vm2 = vcmp.eq.f32.partialorder %v1645_v19, 8.507059e+37 }
 0x758   :  { %v1624_v20 = vmul.f32 %v3404_v10, %v1623_v17  ;;  %v4141_v22 = vadd.f32 %v3334_v41, %v1595_v18 }
 0x75a   :  { %v3406_v23 = vpop.eup %3405  ;;  %v2912_v15 = vmul.f32 -1.442695, %v4141_v22  ;;  %v1625_v28 = vadd.f32 %v3404_v10, %v1624_v20 }
 0x75b   :  { %v3408_v25 = vpop.eup %3407  ;;  %v1619_v27 = vadd.f32 1.0, %v3406_v23 }
 0x75c   :  { %v1637_v29 = vmul.f32 %v3408_v25, %v1618_v11  ;;  %3409 = vpow2.f32 %v2912_v15  ;;  %v1629_v24 = vsel %vm1628_vm13, %v3404_v10, %v1625_v28  ;;  %vm1642_vm14 = vweird.f32 %v3408_v25 }
 0x75d   :  { %3411 = vrcp.f32 %v1619_v27  ;;  %v1634_v38 = vsel %vm1631_vm15, %v1633_v32, %v1629_v24  ;;  %vm1643_vm1 = vmor %vm1641_vm7, %vm1642_vm14  ;;  %v1662_v53 = vand.u32 2147483648, %v1619_v27  ;;  %vm1656_vm4 = vweird.f32 %v1619_v27  ;;  %v3299_v32 = vld [vmem:[%s4368_s17 + $0x70] sm:$0xff] }
 0x75e   :  { %v1638_v33 = vsub.f32 1.0, %v1637_v29  ;;  %v1681_v44 = vmul.f32 %v1634_v38, %v4126_v46  ;;  %v1660_v55 = vand.u32 2147483647, %v1619_v27  ;;  %1956 = vmatpush.bf16.msrb.mxu3 %v3299_v32  ;;  %v3336_v32 = vld [vmem:[%s4370_s18 + $0x1] ss:$0 sm:$0xff] }
 0x75f   :  { %v1663_v63 = vor.u32 1.1754944e-38, %v1662_v53 }
 0x760   :  { %v1639_v21 = vmul.f32 %v3408_v25, %v1638_v33  ;;  %vm1661_vm10 = vcmp.eq.f32.partialorder %v1660_v55, 8.507059e+37 }
 0x762   :  { %v3410_v35 = vpop.eup %3409  ;;  %v1640_v36 = vadd.f32 %v3408_v25, %v1639_v21 }
 0x763   :  { %v3412_v37 = vpop.eup %3411  ;;  %v1620_v40 = vadd.f32 1.0, %v3410_v35 }
 0x764   :  { %v1644_v41 = vsel %vm1643_vm1, %v3408_v25, %v1640_v36  ;;  %v1652_v42 = vmul.f32 %v3412_v37, %v1619_v27  ;;  %vm1657_vm3 = vweird.f32 %v3412_v37 }
 0x765   :  { %v1649_v43 = vsel %vm1646_vm2, %v1648_v39, %v1644_v41  ;;  %3413 = vrcp.f32 %v1620_v40  ;;  %vm1658_vm5 = vmor %vm1656_vm4, %vm1657_vm3  ;;  %v1677_v58 = vand.u32 2147483648, %v1620_v40  ;;  %v1675_v46 = vand.u32 2147483647, %v1620_v40  ;;  %v3298_v39 = vld [vmem:[%s4368_s17 + $0x68] sm:$0xff] }
 0x766   :  { %v1682_v45 = vmul.f32 %v1649_v43, %v4135_v57  ;;  %v1653_v47 = vsub.f32 1.0, %v1652_v42  ;;  %vm1671_vm11 = vweird.f32 %v1620_v40  ;;  %1957 = vmatpush.bf16.msrb.mxu3 %v3298_v39 }
 0x767   :  { %v1678_v1 = vor.u32 1.1754944e-38, %v1677_v58  ;;  %vm1676_vm12 = vcmp.eq.f32.partialorder %v1675_v46, 8.507059e+37 }
 0x768   :  { %v1702_v48 = vpack.c.bf16 %v1682_v45, %v1681_v44  ;;  %v1654_v49 = vmul.f32 %v3412_v37, %v1653_v47  ;;  %v3297_v44 = vld [vmem:[%s4368_s17 + $0x60] sm:$0xff] }
 0x76a   :  { %1765 = vmatmul.bf16.vlgmr.msra.gmra.mxu1 %v1702_v48  ;;  %v1655_v51 = vadd.f32 %v3412_v37, %v1654_v49  ;;  %1958 = vmatpush.bf16.msrb.mxu3 %v3297_v44  ;;  %v3301_v44 = vld [vmem:[%s4372_s19 + $0x40] sm:$0xff] }
 0x76b   :  { %v3414_v50 = vpop.eup %3413 }
 0x76c   :  { %v1667_v52 = vmul.f32 %v3414_v50, %v1620_v40  ;;  %v1659_v60 = vsel %vm1658_vm5, %v3412_v37, %v1655_v51  ;;  %vm1672_vm6 = vweird.f32 %v3414_v50 }
 0x76d   :  { %v1664_v0 = vsel %vm1661_vm10, %v1663_v63, %v1659_v60  ;;  %vm1673_vm9 = vmor %vm1671_vm11, %vm1672_vm6  ;;  %v3296_v60 = vld [vmem:[%s4368_s17 + $0x58] sm:$0xff] }
 0x76e   :  { %v1668_v56 = vsub.f32 1.0, %v1667_v52  ;;  %v1683_v5 = vmul.f32 %v1664_v0, %v4138_v6  ;;  %1959 = vmatpush.bf16.msrb.mxu3 %v3296_v60 }
 0x770   :  { %v1669_v61 = vmul.f32 %v3414_v50, %v1668_v56 }
 0x772   :  { %v1670_v57 = vadd.f32 %v3414_v50, %v1669_v61 }
 0x774   :  { %v1674_v2 = vsel %vm1673_vm9, %v3414_v50, %v1670_v57 }
 0x775   :  { %v1679_v3 = vsel %vm1676_vm12, %v1678_v1, %v1674_v2 }
 0x776   :  { %v1684_v26 = vmul.f32 %v1679_v3, %v4141_v22 }
 0x778   :  { %v1703_v59 = vpack.c.bf16 %v1684_v26, %v1683_v5 }
 0x77a   :  { %1770 = vmatmul.bf16.gmra.mxu1 %v1703_v59 }
 0x7e7   :  { %v1766_v7 = vpop.f32.mrf.mxu1 }
 0x7e8   :  { %v4151_v9 = vadd.f32 %v3335_v4, %v1766_v7 }
 0x7ea   :  { %v2962_v12 = vmul.f32 -1.442695, %v4151_v9 }
 0x7ef   :  { %v1768_v10 = vpop.f32.mrf.mxu1 }
 0x7f0   :  { %v4153_v11 = vadd.f32 %v3335_v4, %v1768_v10 }
 0x7f2   :  { %v2963_v13 = vmul.f32 -1.442695, %v4153_v11 }
 0x7f4   :  { %3415 = vpow2.f32 %v2963_v13 }
 0x7f5   :  { %3417 = vpow2.f32 %v2962_v12 }
 0x7f7   :  { %v1771_v6 = vpop.f32.mrf.mxu1 }
 0x7f8   :  { %v4157_v14 = vadd.f32 %v3335_v4, %v1771_v6 }
 0x7fa   :  { %v3416_v16 = vpop.eup %3415  ;;  %v2964_v17 = vmul.f32 -1.442695, %v4157_v14 }
 0x7fb   :  { %v3418_v18 = vpop.eup %3417  ;;  %v4160_v20 = vadd.f32 1.0, %v3416_v16 }
 0x7fc   :  { %3419 = vpow2.f32 %v2964_v17  ;;  %v4162_v22 = vadd.f32 1.0, %v3418_v18 }
 0x7fd   :  { %3421 = vrcp.f32 %v4160_v20  ;;  %vm1812_vm15 = vweird.f32 %v4160_v20  ;;  %v1816_v53 = vand.u32 2147483647, %v4160_v20  ;;  %v1818_v55 = vand.u32 2147483648, %v4160_v20 }
 0x7fe   :  { %3423 = vrcp.f32 %v4162_v22  ;;  %vm1797_vm4 = vweird.f32 %v4162_v22  ;;  %v1801_v57 = vand.u32 2147483647, %v4162_v22  ;;  %v1803_v0 = vand.u32 2147483648, %v4162_v22 }
 0x7ff   :  { %v1773_v23 = vpop.f32.mrf.mxu1  ;;  %v1819_v59 = vor.u32 1.1754944e-38, %v1818_v55  ;;  %vm1817_vm12 = vcmp.eq.f32.partialorder %v1816_v53, 8.507059e+37 }
 0x800   :  { %v4164_v15 = vadd.f32 %v3335_v4, %v1773_v23  ;;  %v1804_v13 = vor.u32 1.1754944e-38, %v1803_v0 }
 0x802   :  { %v3420_v25 = vpop.eup %3419  ;;  %v2965_v27 = vmul.f32 -1.442695, %v4164_v15 }
 0x803   :  { %v1790_v28 = vadd.f32 1.0, %v3420_v25  ;;  %v4169_v29 = vpop.eup %3421 }
 0x804   :  { %3425 = vpow2.f32 %v2965_v27  ;;  %v4171_v30 = vpop.eup %3423  ;;  %v1808_v34 = vmul.f32 %v4169_v29, %v4160_v20  ;;  %vm1813_vm7 = vweird.f32 %v4169_v29 }
 0x805   :  { %3427 = vrcp.f32 %v1790_v28  ;;  %v1793_v21 = vmul.f32 %v4171_v30, %v4162_v22  ;;  %vm1798_vm14 = vweird.f32 %v4171_v30  ;;  %v1833_v48 = vand.u32 2147483648, %v1790_v28  ;;  %vm4214_vm5 = vmor %vm1812_vm15, %vm1813_vm7 }
 0x806   :  { %v1809_v36 = vsub.f32 1.0, %v1808_v34  ;;  %vm1827_vm1 = vweird.f32 %v1790_v28  ;;  %v1831_v50 = vand.u32 2147483647, %v1790_v28  ;;  %vm4220_vm6 = vmor %vm1797_vm4, %vm1798_vm14  ;;  %vm1802_vm14 = vcmp.eq.f32.partialorder %v1801_v57, 8.507059e+37  ;;  %v3306_v34 = vld [vmem:[%s4372_s19 + $0x68] sm:$0xff] }
 0x807   :  { %v1794_v38 = vsub.f32 1.0, %v1793_v21  ;;  %v1834_v2 = vor.u32 1.1754944e-38, %v1833_v48  ;;  %v3304_v21 = vld [vmem:[%s4372_s19 + $0x58] sm:$0xff] }
 0x808   :  { %v1810_v41 = vmul.f32 %v4169_v29, %v1809_v36  ;;  %vm1832_vm10 = vcmp.eq.f32.partialorder %v1831_v50, 8.507059e+37 }
 0x809   :  { %v1795_v43 = vmul.f32 %v4171_v30, %v1794_v38 }
 0x80a   :  { %v3426_v33 = vpop.eup %3425  ;;  %v1811_v49 = vadd.f32 %v4169_v29, %v1810_v41 }
 0x80b   :  { %v3428_v24 = vpop.eup %3427  ;;  %v1791_v19 = vadd.f32 1.0, %v3426_v33  ;;  %v1796_v52 = vadd.f32 %v4171_v30, %v1795_v43  ;;  %v3307_v33 = vld [vmem:[%s4372_s19 + $0x70] sm:$0xff] }
 0x80c   :  { %v1823_v35 = vmul.f32 %v3428_v24, %v1790_v28  ;;  %vm1828_vm13 = vweird.f32 %v3428_v24  ;;  %v1815_v5 = vsel %vm4214_vm5, %v4169_v29, %v1811_v49  ;;  %v3460_v28 = vld [vmem:[%s4369_s5] sm:$0xff]  ;;  %2150 = vmatpush.bf16.msrb.mxu1 %v3307_v33 }
 0x80d   :  { %3429 = vrcp.f32 %v1791_v19  ;;  %vm4198_vm2 = vmor %vm1827_vm1, %vm1828_vm13  ;;  %v1848_v58 = vand.u32 2147483648, %v1791_v19  ;;  %v1846_v63 = vand.u32 2147483647, %v1791_v19  ;;  %vm1842_vm11 = vweird.f32 %v1791_v19 }
 0x80e   :  { %v1824_v37 = vsub.f32 1.0, %v1823_v35  ;;  %v1800_v10 = vsel %vm4220_vm6, %v4171_v30, %v1796_v52  ;;  %v1820_v6 = vsel %vm1817_vm12, %v1819_v59, %v1815_v5 }
 0x80f   :  { %v1849_v4 = vor.u32 1.1754944e-38, %v1848_v58  ;;  %vm1847_vm13 = vcmp.eq.f32.partialorder %v1846_v63, 8.507059e+37  ;;  %v1805_v20 = vsel %vm1802_vm14, %v1804_v13, %v1800_v10  ;;  %v1853_v22 = vmul.f32 %v1820_v6, %v4153_v11  ;;  %v3294_v11 = vld [vmem:[%s4368_s17 + $0x48] sm:$0xff] }
 0x810   :  { %v1825_v40 = vmul.f32 %v3428_v24, %v1824_v37  ;;  %v1852_v25 = vmul.f32 %v1805_v20, %v4151_v9  ;;  %v3293_v9 = vld [vmem:[%s4368_s17 + $0x40] sm:$0xff]  ;;  %2151 = vmatpush.bf16.msrb.mxu1 %v3306_v34  ;;  %v3303_v37 = vld [vmem:[%s4372_s19 + $0x50] sm:$0xff] }
 0x812   :  { %v1826_v45 = vadd.f32 %v3428_v24, %v1825_v40  ;;  %v1856_v27 = vpack.c.bf16 %v1853_v22, %v1852_v25  ;;  %v3302_v40 = vld [vmem:[%s4372_s19 + $0x48] sm:$0xff] }
 0x813   :  { %v3430_v42 = vpop.eup %3429 }
 0x814   :  { %v1838_v47 = vmul.f32 %v3430_v42, %v1791_v19  ;;  %v1830_v61 = vsel %vm4198_vm2, %v3428_v24, %v1826_v45  ;;  %vm1843_vm3 = vweird.f32 %v3430_v42  ;;  %v3305_v24 = vld [vmem:[%s4372_s19 + $0x60] sm:$0xff]  ;;  %v2026_v19 = vpop.f32.mrf.mxu0  ;;  %s4441_s19 = sld [smem:[#allocation17_spill]] }
 0x815   :  { %v1835_v7 = vsel %vm1832_vm10, %v1834_v2, %v1830_v61  ;;  %vm1844_vm9 = vmor %vm1842_vm11, %vm1843_vm3  ;;  %2152 = vmatpush.bf16.msrb.mxu1 %v3305_v24 }
 0x816   :  { %v1839_v51 = vsub.f32 1.0, %v1838_v47  ;;  %v1854_v17 = vmul.f32 %v1835_v7, %v4157_v14  ;;  %v3295_v14 = vld [vmem:[%s4368_s17 + $0x50] sm:$0xff] }
 0x817   :  { %1960 = vmatpush.bf16.msrb.mxu3 %v3295_v14 }
 0x818   :  { %v1840_v46 = vmul.f32 %v3430_v42, %v1839_v51 }
 0x819   :  { %2153 = vmatpush.bf16.msrb.mxu1 %v3304_v21 }
 0x81a   :  { %v1841_v26 = vadd.f32 %v3430_v42, %v1840_v46 }
 0x81b   :  { %1961 = vmatpush.bf16.msrb.mxu3 %v3294_v11 }
 0x81c   :  { %v1845_v12 = vsel %vm1844_vm9, %v3430_v42, %v1841_v26  ;;  %v2028_v41 = vpop.f32.mrf.mxu0 }
 0x81d   :  { %v1850_v16 = vsel %vm1847_vm13, %v1849_v4, %v1845_v12  ;;  %2154 = vmatpush.bf16.msrb.mxu1 %v3303_v37 }
 0x81e   :  { %v1855_v18 = vmul.f32 %v1850_v16, %v4164_v15  ;;  %v3337_v16 = vld [vmem:[%s4371_s20 + $0x1] ss:$0 sm:$0xff] }
 0x81f   :  { %1962 = vmatpush.bf16.msrb.mxu3 %v3293_v9 }
 0x820   :  { %v1857_v23 = vpack.c.bf16 %v1855_v18, %v1854_v17 }
 0x821   :  { %2155 = vmatpush.bf16.msrb.mxu1 %v3302_v40 }
 0x822   :  { %1864 = vmatpush.bf16.msra.mxu2 %v1857_v23 }
 0x825   :  { %2156 = vmatpush.bf16.msrb.mxu1 %v3301_v44 }
 0x826   :  { %1865 = vmatpush.bf16.msra.mxu2 %v1856_v27 }
 0x829   :  { %2966 = vmatmul.msk.bf16.vlgmr.msra.gmra.mxu2 %vm842_vm0, %v3460_v28 }
 0x8ac   :  { %v1867_v15 = vpop.f32.mrf.mxu2 }
 0x8b4   :  { %v1869_v29 = vpop.f32.mrf.mxu2 }
 0x8b5   :  { %v1889_v30 = vpack.c.bf16 %v1869_v29, %v1867_v15 }
 0x8b7   :  { %1963 = vmatmul.bf16.vlgmr.msrb.gmra.mxu3 %v1889_v30 }
 0x93a   :  { %v1964_v35 = vpop.f32.mrf.mxu3 }
 0x93b   :  { %v2027_v36 = vadd.f32 %v2026_v19, %v1964_v35 }
 0x93d   :  { %v2036_v38 = vadd.f32 %v3336_v32, %v2027_v36 }
 0x93f   :  { %v3064_v39 = vmul.f32 -1.442695, %v2036_v38 }
 0x941   :  { %3431 = vpow2.f32 %v3064_v39 }
 0x942   :  { %v1966_v42 = vpop.f32.mrf.mxu3 }
 0x943   :  { %v2029_v43 = vadd.f32 %v2028_v41, %v1966_v42 }
 0x945   :  { %v2037_v45 = vadd.f32 %v3336_v32, %v2029_v43 }
 0x947   :  { %v3432_v47 = vpop.eup %3431  ;;  %v3065_v48 = vmul.f32 -1.442695, %v2037_v45 }
 0x948   :  { %v2044_v49 = vadd.f32 1.0, %v3432_v47 }
 0x949   :  { %3433 = vpow2.f32 %v3065_v48 }
 0x94a   :  { %3435 = vrcp.f32 %v2044_v49  ;;  %v2057_v46 = vand.u32 2147483648, %v2044_v49  ;;  %vm2051_vm15 = vweird.f32 %v2044_v49  ;;  %v2055_v63 = vand.u32 2147483647, %v2044_v49 }
 0x94c   :  { %v2058_v5 = vor.u32 1.1754944e-38, %v2057_v46  ;;  %vm2056_vm2 = vcmp.eq.f32.partialorder %v2055_v63, 8.507059e+37  ;;  %v3312_v46 = vld [vmem:[%s4375_s23 + $0x18] sm:$0xff]  ;;  %v3311_v63 = vld [vmem:[%s4375_s23 + $0x10] sm:$0xff] }
 0x94f   :  { %v3434_v50 = vpop.eup %3433 }
 0x950   :  { %v3436_v51 = vpop.eup %3435  ;;  %v2045_v52 = vadd.f32 1.0, %v3434_v50 }
 0x951   :  { %v2047_v53 = vmul.f32 %v3436_v51, %v2044_v49  ;;  %vm2052_vm0 = vweird.f32 %v3436_v51 }
 0x952   :  { %3437 = vrcp.f32 %v2045_v52  ;;  %vm2053_vm7 = vmor %vm2051_vm15, %vm2052_vm0  ;;  %v2072_v0 = vand.u32 2147483648, %v2045_v52  ;;  %v2070_v3 = vand.u32 2147483647, %v2045_v52  ;;  %vm2066_vm3 = vweird.f32 %v2045_v52 }
 0x953   :  { %v2048_v55 = vsub.f32 1.0, %v2047_v53 }
 0x954   :  { %v2073_v7 = vor.u32 1.1754944e-38, %v2072_v0  ;;  %vm2071_vm5 = vcmp.eq.f32.partialorder %v2070_v3, 8.507059e+37 }
 0x955   :  { %v2049_v56 = vmul.f32 %v3436_v51, %v2048_v55 }
 0x957   :  { %v2050_v60 = vadd.f32 %v3436_v51, %v2049_v56 }
 0x958   :  { %v3438_v58 = vpop.eup %3437 }
 0x959   :  { %v2062_v61 = vmul.f32 %v3438_v58, %v2045_v52  ;;  %v2054_v1 = vsel %vm2053_vm7, %v3436_v51, %v2050_v60  ;;  %vm2067_vm1 = vweird.f32 %v3438_v58  ;;  %v3314_v60 = vld [vmem:[%s4375_s23 + $0x28] sm:$0xff] }
 0x95a   :  { %v2059_v59 = vsel %vm2056_vm2, %v2058_v5, %v2054_v1  ;;  %vm2068_vm4 = vmor %vm2066_vm3, %vm2067_vm1 }
 0x95b   :  { %v2063_v57 = vsub.f32 1.0, %v2062_v61  ;;  %v2076_v12 = vmul.f32 %v2059_v59, %v2036_v38  ;;  %v3313_v61 = vld [vmem:[%s4375_s23 + $0x20] sm:$0xff]  ;;  %v3324_v59 = vld [vmem:[%s4438_s12 + $0x38] sm:$0xff] }
 0x95c   :  { %2424 = vmatpush.bf16.msrb.mxu0 %v3324_v59 }
 0x95d   :  { %v2064_v2 = vmul.f32 %v3438_v58, %v2063_v57  ;;  %v3310_v57 = vld [vmem:[%s4375_s23 + $0x8] sm:$0xff] }
 0x95f   :  { %v2065_v26 = vadd.f32 %v3438_v58, %v2064_v2  ;;  %v3309_v2 = vld [vmem:[%s4375_s23] sm:$0xff] }
 0x961   :  { %v2069_v4 = vsel %vm2068_vm4, %v3438_v58, %v2065_v26  ;;  %v3316_v58 = vld [vmem:[%s4375_s23 + $0x38] sm:$0xff] }
 0x962   :  { %v2074_v10 = vsel %vm2071_vm5, %v2073_v7, %v2069_v4  ;;  %2322 = vmatpush.bf16.msrb.mxu2 %v3316_v58 }
 0x963   :  { %v2077_v13 = vmul.f32 %v2074_v10, %v2037_v45 }
 0x965   :  { %v2095_v6 = vpack.c.bf16 %v2077_v13, %v2076_v12  ;;  %v3323_v12 = vld [vmem:[%s4438_s12 + $0x30] sm:$0xff] }
 0x966   :  { %2425 = vmatpush.bf16.msrb.mxu0 %v3323_v12 }
 0x967   :  { %2157 = vmatmul.bf16.vlgmr.msrb.gmra.mxu1 %v2095_v6 }
 0x9e4   :  { %v2158_v17 = vpop.f32.mrf.mxu1 }
 0x9e5   :  { %v2159_v18 = vadd.f32 %v3337_v16, %v2158_v17 }
 0x9e7   :  { %v3115_v20 = vmul.f32 -1.442695, %v2159_v18 }
 0x9e9   :  { %3439 = vpow2.f32 %v3115_v20 }
 0x9ec   :  { %v2160_v22 = vpop.f32.mrf.mxu1 }
 0x9ed   :  { %v2161_v23 = vadd.f32 %v3337_v16, %v2160_v22 }
 0x9ef   :  { %v3440_v25 = vpop.eup %3439  ;;  %v3116_v27 = vmul.f32 -1.442695, %v2161_v23 }
 0x9f0   :  { %v2169_v28 = vadd.f32 1.0, %v3440_v25 }
 0x9f1   :  { %3441 = vpow2.f32 %v3116_v27 }
 0x9f2   :  { %3443 = vrcp.f32 %v2169_v28  ;;  %v2182_v30 = vand.u32 2147483648, %v2169_v28  ;;  %v2180_v33 = vand.u32 2147483647, %v2169_v28  ;;  %vm2176_vm10 = vweird.f32 %v2169_v28 }
 0x9f4   :  { %v2183_v21 = vor.u32 1.1754944e-38, %v2182_v30  ;;  %vm2181_vm9 = vcmp.eq.f32.partialorder %v2180_v33, 8.507059e+37 }
 0x9f7   :  { %v3442_v14 = vpop.eup %3441 }
 0x9f8   :  { %v3444_v11 = vpop.eup %3443  ;;  %v2170_v9 = vadd.f32 1.0, %v3442_v14 }
 0x9f9   :  { %v2172_v15 = vmul.f32 %v3444_v11, %v2169_v28  ;;  %vm2177_vm6 = vweird.f32 %v3444_v11  ;;  %v3338_v28 = vld [vmem:[%s4439_s7] ss:$0 sm:$0xff] }
 0x9fa   :  { %3445 = vrcp.f32 %v2170_v9  ;;  %vm2178_vm11 = vmor %vm2176_vm10, %vm2177_vm6  ;;  %v2197_v38 = vand.u32 2147483648, %v2170_v9  ;;  %v2195_v40 = vand.u32 2147483647, %v2170_v9  ;;  %vm2191_vm13 = vweird.f32 %v2170_v9 }
 0x9fb   :  { %v2173_v29 = vsub.f32 1.0, %v2172_v15 }
 0x9fc   :  { %v2198_v43 = vor.u32 1.1754944e-38, %v2197_v38  ;;  %vm2196_vm0 = vcmp.eq.f32.partialorder %v2195_v40, 8.507059e+37 }
 0x9fd   :  { %v2174_v31 = vmul.f32 %v3444_v11, %v2173_v29  ;;  %v3339_v29 = vld [vmem:[%s4440_s11] ss:$0 sm:$0xff] }
 0x9ff   :  { %v2175_v34 = vadd.f32 %v3444_v11, %v2174_v31 }
 0xa00   :  { %v3446_v24 = vpop.eup %3445 }
 0xa01   :  { %v2179_v19 = vsel %vm2178_vm11, %v3444_v11, %v2175_v34  ;;  %v2187_v32 = vmul.f32 %v3446_v24, %v2170_v9  ;;  %vm2192_vm12 = vweird.f32 %v3446_v24 }
 0xa02   :  { %v2184_v35 = vsel %vm2181_vm9, %v2183_v21, %v2179_v19  ;;  %vm2193_vm14 = vmor %vm2191_vm13, %vm2192_vm12  ;;  %v3322_v21 = vld [vmem:[%s4438_s12 + $0x28] sm:$0xff]  ;;  %v3321_v19 = vld [vmem:[%s4438_s12 + $0x20] sm:$0xff] }
 0xa03   :  { %v2201_v36 = vmul.f32 %v2184_v35, %v2159_v18  ;;  %v2188_v37 = vsub.f32 1.0, %v2187_v32  ;;  %2426 = vmatpush.bf16.msrb.mxu0 %v3322_v21  ;;  %v3320_v32 = vld [vmem:[%s4438_s12 + $0x18] sm:$0xff]  ;;  %v3319_v35 = vld [vmem:[%s4438_s12 + $0x10] sm:$0xff] }
 0xa05   :  { %v2189_v39 = vmul.f32 %v3446_v24, %v2188_v37  ;;  %v2203_v41 = vadd.f32 %v2201_v36, %v3946_v54  ;;  %v3318_v36 = vld [vmem:[%s4438_s12 + $0x8] sm:$0xff]  ;;  %v3317_v37 = vld [vmem:[%s4438_s12] sm:$0xff] }
 0xa07   :  { %v2190_v42 = vadd.f32 %v3446_v24, %v2189_v39  ;;  %2207 = vadd.xlane.f32.xlu2 %v2203_v41  ;;  %2427 = vmatpush.bf16.msrb.mxu0 %v3321_v19 }
 0xa09   :  { %v2194_v44 = vsel %vm2193_vm14, %v3446_v24, %v2190_v42  ;;  %v2338_v24 = vld [vmem:[%s4441_s19] sm:$0x1] }
 0xa0a   :  { %v2199_v45 = vsel %vm2196_vm0, %v2198_v43, %v2194_v44  ;;  %v3340_v43 = vld [vmem:[%s4443_s15] ss:$0 sm:$0xff] }
 0xa0b   :  { %v2202_v47 = vmul.f32 %v2199_v45, %v2161_v23  ;;  %2428 = vmatpush.bf16.msrb.mxu0 %v3320_v32 }
 0xa0d   :  { %v2204_v48 = vadd.f32 %v2202_v47, %v3952_v62  ;;  %v3315_v62 = vld [vmem:[%s4375_s23 + $0x30] sm:$0xff]  ;;  %s4444_s23 = sld [smem:[#allocation20_spill]] }
 0xa0e   :  { %2323 = vmatpush.bf16.msrb.mxu2 %v3315_v62 }
 0xa0f   :  { %2209 = vadd.xlane.f32.xlu0 %v2204_v48  ;;  %2429 = vmatpush.bf16.msrb.mxu0 %v3319_v35 }
 0xa12   :  { %2324 = vmatpush.bf16.msrb.mxu2 %v3314_v60 }
 0xa13   :  { %2430 = vmatpush.bf16.msrb.mxu0 %v3318_v36 }
 0xa16   :  { %2325 = vmatpush.bf16.msrb.mxu2 %v3313_v61 }
 0xa17   :  { %2431 = vmatpush.bf16.msrb.mxu0 %v3317_v37 }
 0xa1a   :  { %2326 = vmatpush.bf16.msrb.mxu2 %v3312_v46 }
 0xa1e   :  { %2327 = vmatpush.bf16.msrb.mxu2 %v3311_v63 }
 0xa22   :  { %2328 = vmatpush.bf16.msrb.mxu2 %v3310_v57 }
 0xa26   :  { %2329 = vmatpush.bf16.msrb.mxu2 %v3309_v2 }
 0xa7a   :  { %v2208_v49 = vpop.xlane.xlu2 %2207 }
 0xa7b   :  { %v2211_v50 = vmul.f32 %v2208_v49, %v3608_v8 }
 0xa7d   :  { %v2213_v51 = vsub.f32 %v2203_v41, %v2211_v50 }
 0xa7f   :  { %v2215_v52 = vmul.f32 %v2213_v51, %v2213_v51 }
 0xa81   :  { %2217 = vadd.xlane.f32.xlu1 %v2215_v52 }
 0xa82   :  { %v2210_v53 = vpop.xlane.xlu0 %2209 }
 0xa83   :  { %v2212_v54 = vmul.f32 %v2210_v53, %v3608_v8 }
 0xa85   :  { %v2214_v55 = vsub.f32 %v2204_v48, %v2212_v54 }
 0xa87   :  { %v2216_v56 = vmul.f32 %v2214_v55, %v2214_v55 }
 0xa89   :  { %2219 = vadd.xlane.f32.xlu2 %v2216_v56 }
 0xaf4   :  { %v2218_v0 = vpop.xlane.xlu1 %2217 }
 0xaf5   :  { %v2221_v1 = vmul.f32 %v2218_v0, %v3608_v8 }
 0xaf7   :  { %v2223_v3 = vadd.f32 1e-05, %v2221_v1 }
 0xaf9   :  { %3447 = vrsqrt.f32 %v2223_v3  ;;  %vm2231_vm7 = vweird.f32 %v2223_v3 }
 0xafc   :  { %v2220_v5 = vpop.xlane.xlu2 %2219 }
 0xafd   :  { %v2222_v26 = vmul.f32 %v2220_v5, %v3608_v8 }
 0xaff   :  { %v3448_v7 = vpop.eup %3447  ;;  %v2224_v4 = vadd.f32 1e-05, %v2222_v26 }
 0xb00   :  { %v2226_v10 = vmul.f32 %v3448_v7, %v2223_v3  ;;  %vm2232_vm15 = vweird.f32 %v3448_v7 }
 0xb01   :  { %3449 = vrsqrt.f32 %v2224_v4  ;;  %vm2233_vm1 = vmor %vm2231_vm7, %vm2232_vm15  ;;  %vm2241_vm3 = vweird.f32 %v2224_v4 }
 0xb02   :  { %v2227_v13 = vmul.f32 %v3448_v7, %v2226_v10 }
 0xb04   :  { %v2228_v6 = vmul.f32 0.5, %v2227_v13 }
 0xb06   :  { %v2229_v16 = vsub.f32 1.5, %v2228_v6 }
 0xb07   :  { %v3450_v17 = vpop.eup %3449 }
 0xb08   :  { %v2230_v18 = vmul.f32 %v3448_v7, %v2229_v16  ;;  %v2236_v8 = vmul.f32 %v3450_v17, %v2224_v4  ;;  %vm2242_vm2 = vweird.f32 %v3450_v17 }
 0xb09   :  { %vm2243_vm4 = vmor %vm2241_vm3, %vm2242_vm2 }
 0xb0a   :  { %v2237_v20 = vmul.f32 %v3450_v17, %v2236_v8  ;;  %v2234_v22 = vsel %vm2233_vm1, %v3448_v7, %v2230_v18 }
 0xb0b   :  { %v2245_v27 = vmul.f32 %v2234_v22, %v2213_v51 }
 0xb0c   :  { %v2238_v23 = vmul.f32 0.5, %v2237_v20 }
 0xb0d   :  { %v2250_v15 = vmul.f32 %v3338_v28, %v2245_v27 }
 0xb0e   :  { %v2239_v25 = vsub.f32 1.5, %v2238_v23 }
 0xb0f   :  { %v2255_v31 = vadd.f32 %v3339_v29, %v2250_v15 }
 0xb10   :  { %v2240_v14 = vmul.f32 %v3450_v17, %v2239_v25 }
 0xb12   :  { %v2244_v11 = vsel %vm2243_vm4, %v3450_v17, %v2240_v14 }
 0xb13   :  { %v2246_v9 = vmul.f32 %v2244_v11, %v2214_v55 }
 0xb15   :  { %v2251_v30 = vmul.f32 %v3338_v28, %v2246_v9 }
 0xb17   :  { %v2256_v33 = vadd.f32 %v3339_v29, %v2251_v30 }
 0xb19   :  { %v2257_v34 = vpack.c.bf16 %v2256_v33, %v2255_v31 }
 0xb1b   :  { %2330 = vmatmul.bf16.vlgmr.msrb.gmra.mxu2 %v2257_v34  ;;  %2349 = vmatpush.bf16.msra.mxu3 %v2257_v34 }
 0xb1e   :  { %3149 = vmatmul.msk.bf16.vlgmr.msra.gmra.mxu3 %vm176_vm8, %v2338_v24 }
 0xb9e   :  { %v2331_v38 = vpop.f32.mrf.mxu2 }
 0xb9f   :  { %2336 = vst [vmem:[%s4442_s24] sm:$0xff] %v2331_v38 }
 0xba1   :  { %v2351_v39 = vpop.f32.mrf.mxu3 }
 0xba2   :  { %v2355_v40 = vpack.c.bf16 %v2351_v39, %v2351_v39 }
 0xba4   :  { %2432 = vmatmul.bf16.vlgmr.msrb.gmra.mxu0 %v2355_v40 }
 0xba6   :  { %v2333_v41 = vpop.f32.mrf.mxu2 }
 0xba7   :  { %2337 = vst [vmem:[%s4442_s24 + $0x8] sm:$0xff] %v2333_v41 }
 0xba9   :  { %v2353_v42 = vpop.f32.mrf.mxu3 }
 0xc21   :  { %v2433_v44 = vpop.f32.mrf.mxu0 }
 0xc22   :  { %v2434_v45 = vadd.f32 %v3340_v43, %v2433_v44 }
 0xc24   :  { %2437 = vst [vmem:[%s4444_s23] sm:$0x3] %v2434_v45 }
 0xc29   :  { %v2435_v47 = vpop.f32.mrf.mxu0 }

</bundles_post_ra>
